<compile_context>
chip_gen: v7x
topology: tpu7x:2x2x1
jax: 0.10.0
libtpu: 0.0.40
codegen_flags: <defaults>
</compile_context>

<pallas_src>
import functools

import jax
import jax.numpy as jnp
from jax import lax
from jax.experimental import pallas as pl
from jax.experimental.pallas import tpu as pltpu


# ----------------------------- kernel helpers --------------------------------

def _layernorm(x, g, b, eps=1e-5):
    mu = jnp.mean(x, axis=-1, keepdims=True)
    xc = x - mu
    var = jnp.mean(xc * xc, axis=-1, keepdims=True)
    inv = lax.rsqrt(var + eps)
    return xc * inv * g + b


def _gelu_exact(x):
    # nn.GELU() default = exact erf formulation
    return 0.5 * x * (1.0 + lax.erf(x * (1.0 / jnp.sqrt(2.0).astype(x.dtype))))


# ----------------------------- kernel body ------------------------------------

def cross_block_kernel(f1_ref, f2_ref,          # (Bb, N, C) activations (f32)
                       vec_ref,                 # (11, C) packed LN gammas/betas + biases (f32)
                       wqkvp_ref,               # (4, C, C) packed wq*scale, wk, wv, wp (bf16)
                       b1_ref,                  # (1, hidden) f32
                       w1_ref, w2_ref,          # (C, hidden), (hidden, C) bf16
                       out_ref):                # (Bb, N, C)
    nb, n_tok, cdim = f1_ref.shape
    m = nb * n_tok

    # flatten batch block into the matmul M dimension
    x1 = f1_ref[...].reshape(m, cdim)           # f32, residual shortcut
    x2 = f2_ref[...].reshape(m, cdim)

    ln1g, ln1b = vec_ref[0:1, :], vec_ref[1:2, :]
    ln2g, ln2b = vec_ref[2:3, :], vec_ref[3:4, :]
    ln3g, ln3b = vec_ref[4:5, :], vec_ref[5:6, :]
    bq, bk, bv = vec_ref[6:7, :], vec_ref[7:8, :], vec_ref[8:9, :]
    bp, b2 = vec_ref[9:10, :], vec_ref[10:11, :]

    # pre-norms (f32), then bf16 operands for the MXU
    n1 = _layernorm(x1, ln1g, ln1b).astype(jnp.bfloat16)
    n2 = _layernorm(x2, ln2g, ln2b).astype(jnp.bfloat16)

    wq, wk, wv, wp = wqkvp_ref[0], wqkvp_ref[1], wqkvp_ref[2], wqkvp_ref[3]

    # QKV projections on the full (Bb*N, C) slab; scale already folded into wq/bq
    q = jnp.dot(n1, wq, preferred_element_type=jnp.float32) + bq
    k = jnp.dot(n2, wk, preferred_element_type=jnp.float32) + bk
    v = jnp.dot(n2, wv, preferred_element_type=jnp.float32) + bv

    qb = q.astype(jnp.bfloat16).reshape(nb, n_tok, cdim)
    kb = k.astype(jnp.bfloat16).reshape(nb, n_tok, cdim)
    vb = v.astype(jnp.bfloat16).reshape(nb, n_tok, cdim)

    # scores: contract the channel dims directly (no explicit k transpose)
    s = lax.dot_general(qb, kb, (((2,), (2,)), ((0,), (0,))),
                        preferred_element_type=jnp.float32)        # (Bb, N, N)
    # TODO(synk): optional boolean `mask` branch (mask=None path implemented only)
    # TODO(synk): for large N, tile KV with an online-softmax loop instead of the
    #             full (N, N) score matrix (needed on v7x's 64 MiB VMEM).
    s = s - jnp.max(s, axis=-1, keepdims=True)
    p = jnp.exp(s)
    p = p * pl.reciprocal(jnp.sum(p, axis=-1, keepdims=True), approx=True)

    ctx = lax.dot_general(p.astype(jnp.bfloat16), vb,
                          (((2,), (1,)), ((0,), (0,))),
                          preferred_element_type=jnp.float32)      # (Bb, N, C)
    ctx = ctx.reshape(m, cdim).astype(jnp.bfloat16)
    ctx = jnp.dot(ctx, wp, preferred_element_type=jnp.float32) + bp

    attn_out = x1 + ctx                                            # residual 1 (f32)

    # MLP branch
    n3 = _layernorm(attn_out, ln3g, ln3b).astype(jnp.bfloat16)
    h = jnp.dot(n3, w1_ref[...], preferred_element_type=jnp.float32) + b1_ref[...]
    h = _gelu_exact(h).astype(jnp.bfloat16)
    mlp = jnp.dot(h, w2_ref[...], preferred_element_type=jnp.float32) + b2

    out = attn_out + mlp                                           # residual 2
    # TODO(synk): C < 128 lanes -> stores remain masked; lane-dense repack skipped.
    out_ref[...] = out.reshape(nb, n_tok, cdim).astype(out_ref.dtype)


# ------------------------------ wrapper ----------------------------------------

def _pick_batch_block(batch, n_tok, cdim, hidden, budget_bytes=8 << 20):
    """Largest divisor of `batch` whose per-step activation footprint fits the
    budget. Bigger blocks fill the MXU M dimension and amortize the ~0.35 us
    per-grid-step overhead."""
    best = 1
    for bb in range(1, batch + 1):
        if batch % bb:
            continue
        m = bb * n_tok
        approx = (6 * m * cdim + bb * n_tok * n_tok + m * hidden) * 4
        if approx <= budget_bytes:
            best = bb
    return best


def _pack_params(params, scale):
    """Fold the attention scale into wq/bq and pack the 18 small parameter
    arrays into 5 (matmul weights as bf16, vectors stay f32)."""
    vecs = jnp.concatenate(
        [params["ln1_g"], params["ln1_b"],
         params["ln2_g"], params["ln2_b"],
         params["ln3_g"], params["ln3_b"],
         params["bq"] * scale, params["bk"], params["bv"],
         params["bp"], params["b2"]], axis=0).astype(jnp.float32)          # (11, C)
    wqkvp = jnp.stack([params["wq"] * scale, params["wk"],
                       params["wv"], params["wp"]], axis=0).astype(jnp.bfloat16)
    return (vecs, wqkvp,
            params["b1"].astype(jnp.float32),
            params["w1"].astype(jnp.bfloat16),
            params["w2"].astype(jnp.bfloat16))


def cross_transformer_block(fmap1, fmap2, params):
    """fmap1, fmap2: (B, H, W, C) float32. Returns (B, H, W, C)."""
    B, H, W, C = fmap1.shape
    N = H * W
    hidden = params["w1"].shape[1]
    scale = float(C) ** (-0.5)

    f1 = fmap1.reshape(B, N, C)
    f2 = fmap2.reshape(B, N, C)
    vecs, wqkvp, b1, w1, w2 = _pack_params(params, scale)

    bb = _pick_batch_block(B, N, C, hidden)
    grid = (B // bb,)

    tok_spec = pl.BlockSpec((bb, N, C), lambda i: (i, 0, 0))

    def full_spec(arr, nd):
        return pl.BlockSpec(arr.shape, (lambda i, _nd=nd: (0,) * _nd))

    out = pl.pallas_call(
        cross_block_kernel,
        out_shape=jax.ShapeDtypeStruct((B, N, C), fmap1.dtype),
        grid_spec=pltpu.PrefetchScalarGridSpec(
            num_scalar_prefetch=0,
            grid=grid,
            in_specs=[tok_spec, tok_spec,
                      full_spec(vecs, 2), full_spec(wqkvp, 3), full_spec(b1, 2),
                      full_spec(w1, 2), full_spec(w2, 2)],
            out_specs=pl.BlockSpec((bb, N, C), lambda i: (i, 0, 0)),
        ),
        compiler_params=pltpu.CompilerParams(
            dimension_semantics=("parallel",),
            vmem_limit_bytes=64 * 1024 * 1024),
    )(f1, f2, vecs, wqkvp, b1, w1, w2)

    return out.reshape(B, H, W, C)


# ------------------------ deterministic params ----------------------------------

def init_params(key, dim, mlp_scale):
    hidden = dim * mlp_scale

    def linear(key, fan_in, fan_out):
        k1, k2 = jax.random.split(key)
        bound = 1.0 / (fan_in ** 0.5)
        w = jax.random.uniform(k1, (fan_in, fan_out), jnp.float32, -bound, bound)
        b = jax.random.uniform(k2, (1, fan_out), jnp.float32, -bound, bound)
        return w, b

    ks = jax.random.split(key, 6)
    wq, bq = linear(ks[0], dim, dim)
    wk, bk = linear(ks[1], dim, dim)
    wv, bv = linear(ks[2], dim, dim)
    wp, bp = linear(ks[3], dim, dim)
    w1, b1 = linear(ks[4], dim, hidden)
    w2, b2 = linear(ks[5], hidden, dim)

    ones = jnp.ones((1, dim), jnp.float32)
    zeros = jnp.zeros((1, dim), jnp.float32)
    return dict(
        ln1_g=ones, ln1_b=zeros, ln2_g=ones, ln2_b=zeros, ln3_g=ones, ln3_b=zeros,
        wq=wq, bq=bq, wk=wk, bk=bk, wv=wv, bv=bv, wp=wp, bp=bp,
        w1=w1, b1=b1, w2=w2, b2=b2,
    )


# --------------------------- pure-JAX f32 reference ------------------------------

def reference(fmap1, fmap2, params):
    B, H, W, C = fmap1.shape
    N = H * W
    scale = float(C) ** (-0.5)
    p = params

    def ln(x, g, b, eps=1e-5):
        mu = jnp.mean(x, axis=-1, keepdims=True)
        var = jnp.mean((x - mu) ** 2, axis=-1, keepdims=True)
        return (x - mu) / jnp.sqrt(var + eps) * g + b

    x1 = fmap1.reshape(B, N, C)
    x2 = fmap2.reshape(B, N, C)
    n1 = ln(x1, p["ln1_g"], p["ln1_b"])
    n2 = ln(x2, p["ln2_g"], p["ln2_b"])
    q = n1 @ p["wq"] + p["bq"]
    k = n2 @ p["wk"] + p["bk"]
    v = n2 @ p["wv"] + p["bv"]
    attn = jax.nn.softmax((q * scale) @ jnp.swapaxes(k, 1, 2), axis=-1)
    ctx = attn @ v
    ctx = ctx @ p["wp"] + p["bp"]
    attn_out = x1 + ctx
    n3 = ln(attn_out, p["ln3_g"], p["ln3_b"])
    h = jax.nn.gelu(n3 @ p["w1"] + p["b1"], approximate=False)
    m = h @ p["w2"] + p["b2"]
    return (attn_out + m).reshape(B, H, W, C)


# --------------------------------- main ------------------------------------------

if __name__ == "__main__":
    B, H, W, C = 2, 8, 8, 32
    mlp_scale = 4

    key = jax.random.PRNGKey(0)
    k1, k2, k3 = jax.random.split(key, 3)
    fmap1 = jax.random.normal(k1, (B, H, W, C), jnp.float32)
    fmap2 = jax.random.normal(k2, (B, H, W, C), jnp.float32)
    params = init_params(k3, C, mlp_scale)

    out = cross_transformer_block(fmap1, fmap2, params)
    out = jax.block_until_ready(out)

    ref = reference(fmap1, fmap2, params)
    assert out.shape == (B, H, W, C)
    # Matmul operands are bf16 (f32 accumulation), so compare against the f32
    # reference with a correspondingly relaxed tolerance.
    assert jnp.allclose(out, ref, rtol=5e-2, atol=5e-2), "mismatch vs reference"

    print("KERNEL_OK")
</pallas_src>

<mosaic_0001>
module attributes {stable_mosaic.version = 11 : i64} {
  func.func @cross_block_kernel(%arg0: i32, %arg1: memref<2x64x32xf32, #tpu.memory_space<vmem>>, %arg2: memref<2x64x32xf32, #tpu.memory_space<vmem>>, %arg3: memref<11x32xf32, #tpu.memory_space<vmem>>, %arg4: memref<4x32x32xbf16, #tpu.memory_space<vmem>>, %arg5: memref<1x128xf32, #tpu.memory_space<vmem>>, %arg6: memref<32x128xbf16, #tpu.memory_space<vmem>>, %arg7: memref<128x32xbf16, #tpu.memory_space<vmem>>, %arg8: memref<2x64x32xf32, #tpu.memory_space<vmem>>) attributes {dimension_semantics = [#tpu.dimension_semantics<parallel>], iteration_bounds = array<i64: 1>, scalar_prefetch = 0 : i64, scratch_operands = 0 : i64, tpu.core_type = #tpu.core_type<tc>, window_params = [{transform_indices = @transform_0, window_bounds = array<i64: 2, 64, 32>}, {transform_indices = @transform_1, window_bounds = array<i64: 2, 64, 32>}, {pipeline_mode = #tpu.pipeline_mode<synchronous>, transform_indices = @transform_2, window_bounds = array<i64: 11, 32>}, {pipeline_mode = #tpu.pipeline_mode<synchronous>, transform_indices = @transform_3, window_bounds = array<i64: 4, 32, 32>}, {pipeline_mode = #tpu.pipeline_mode<synchronous>, transform_indices = @transform_4, window_bounds = array<i64: 1, 128>}, {pipeline_mode = #tpu.pipeline_mode<synchronous>, transform_indices = @transform_5, window_bounds = array<i64: 32, 128>}, {pipeline_mode = #tpu.pipeline_mode<synchronous>, transform_indices = @transform_6, window_bounds = array<i64: 128, 32>}, {transform_indices = @transform_7, window_bounds = array<i64: 2, 64, 32>}]} {
    %c0 = arith.constant 0 : index
    %c0_0 = arith.constant 0 : index
    %c0_1 = arith.constant 0 : index
    %0 = vector.load %arg1[%c0, %c0_0, %c0_1] : memref<2x64x32xf32, #tpu.memory_space<vmem>>, vector<2x64x32xf32>
    %1 = vector.shape_cast %0 : vector<2x64x32xf32> to vector<128x32xf32>
    %c0_2 = arith.constant 0 : index
    %c0_3 = arith.constant 0 : index
    %c0_4 = arith.constant 0 : index
    %2 = vector.load %arg2[%c0_2, %c0_3, %c0_4] : memref<2x64x32xf32, #tpu.memory_space<vmem>>, vector<2x64x32xf32>
    %3 = vector.shape_cast %2 : vector<2x64x32xf32> to vector<128x32xf32>
    %c0_5 = arith.constant 0 : index
    %c0_6 = arith.constant 0 : index
    %4 = vector.load %arg3[%c0_5, %c0_6] : memref<11x32xf32, #tpu.memory_space<vmem>>, vector<1x32xf32>
    %c1 = arith.constant 1 : index
    %c0_7 = arith.constant 0 : index
    %5 = vector.load %arg3[%c1, %c0_7] : memref<11x32xf32, #tpu.memory_space<vmem>>, vector<1x32xf32>
    %c2 = arith.constant 2 : index
    %c0_8 = arith.constant 0 : index
    %6 = vector.load %arg3[%c2, %c0_8] : memref<11x32xf32, #tpu.memory_space<vmem>>, vector<1x32xf32>
    %c3 = arith.constant 3 : index
    %c0_9 = arith.constant 0 : index
    %7 = vector.load %arg3[%c3, %c0_9] : memref<11x32xf32, #tpu.memory_space<vmem>>, vector<1x32xf32>
    %c4 = arith.constant 4 : index
    %c0_10 = arith.constant 0 : index
    %8 = vector.load %arg3[%c4, %c0_10] : memref<11x32xf32, #tpu.memory_space<vmem>>, vector<1x32xf32>
    %c5 = arith.constant 5 : index
    %c0_11 = arith.constant 0 : index
    %9 = vector.load %arg3[%c5, %c0_11] : memref<11x32xf32, #tpu.memory_space<vmem>>, vector<1x32xf32>
    %c6 = arith.constant 6 : index
    %c0_12 = arith.constant 0 : index
    %10 = vector.load %arg3[%c6, %c0_12] : memref<11x32xf32, #tpu.memory_space<vmem>>, vector<1x32xf32>
    %c7 = arith.constant 7 : index
    %c0_13 = arith.constant 0 : index
    %11 = vector.load %arg3[%c7, %c0_13] : memref<11x32xf32, #tpu.memory_space<vmem>>, vector<1x32xf32>
    %c8 = arith.constant 8 : index
    %c0_14 = arith.constant 0 : index
    %12 = vector.load %arg3[%c8, %c0_14] : memref<11x32xf32, #tpu.memory_space<vmem>>, vector<1x32xf32>
    %c9 = arith.constant 9 : index
    %c0_15 = arith.constant 0 : index
    %13 = vector.load %arg3[%c9, %c0_15] : memref<11x32xf32, #tpu.memory_space<vmem>>, vector<1x32xf32>
    %c10 = arith.constant 10 : index
    %c0_16 = arith.constant 0 : index
    %14 = vector.load %arg3[%c10, %c0_16] : memref<11x32xf32, #tpu.memory_space<vmem>>, vector<1x32xf32>
    %cst = arith.constant dense<0.000000e+00> : vector<128xf32>
    %15 = vector.multi_reduction <add>, %1, %cst [1] : vector<128x32xf32> to vector<128xf32>
    %16 = vector.shape_cast %15 : vector<128xf32> to vector<128x1xf32>
    %cst_17 = arith.constant 3.200000e+01 : f32
    %17 = vector.broadcast %cst_17 : f32 to vector<128x1xf32>
    %18 = arith.divf %16, %17 : vector<128x1xf32>
    %19 = vector.broadcast %18 : vector<128x1xf32> to vector<128x32xf32>
    %20 = arith.subf %1, %19 : vector<128x32xf32>
    %21 = arith.mulf %20, %20 : vector<128x32xf32>
    %cst_18 = arith.constant dense<0.000000e+00> : vector<128xf32>
    %22 = vector.multi_reduction <add>, %21, %cst_18 [1] : vector<128x32xf32> to vector<128xf32>
    %23 = vector.shape_cast %22 : vector<128xf32> to vector<128x1xf32>
    %cst_19 = arith.constant 3.200000e+01 : f32
    %24 = vector.broadcast %cst_19 : f32 to vector<128x1xf32>
    %25 = arith.divf %23, %24 : vector<128x1xf32>
    %cst_20 = arith.constant 9.99999974E-6 : f32
    %26 = vector.broadcast %cst_20 : f32 to vector<128x1xf32>
    %27 = arith.addf %25, %26 : vector<128x1xf32>
    %28 = math.rsqrt %27 : vector<128x1xf32>
    %29 = vector.broadcast %28 : vector<128x1xf32> to vector<128x32xf32>
    %30 = arith.mulf %20, %29 : vector<128x32xf32>
    %31 = vector.broadcast %4 : vector<1x32xf32> to vector<128x32xf32>
    %32 = arith.mulf %30, %31 : vector<128x32xf32>
    %33 = vector.broadcast %5 : vector<1x32xf32> to vector<128x32xf32>
    %34 = arith.addf %32, %33 : vector<128x32xf32>
    %35 = arith.truncf %34 : vector<128x32xf32> to vector<128x32xbf16>
    %cst_21 = arith.constant dense<0.000000e+00> : vector<128xf32>
    %36 = vector.multi_reduction <add>, %3, %cst_21 [1] : vector<128x32xf32> to vector<128xf32>
    %37 = vector.shape_cast %36 : vector<128xf32> to vector<128x1xf32>
    %cst_22 = arith.constant 3.200000e+01 : f32
    %38 = vector.broadcast %cst_22 : f32 to vector<128x1xf32>
    %39 = arith.divf %37, %38 : vector<128x1xf32>
    %40 = vector.broadcast %39 : vector<128x1xf32> to vector<128x32xf32>
    %41 = arith.subf %3, %40 : vector<128x32xf32>
    %42 = arith.mulf %41, %41 : vector<128x32xf32>
    %cst_23 = arith.constant dense<0.000000e+00> : vector<128xf32>
    %43 = vector.multi_reduction <add>, %42, %cst_23 [1] : vector<128x32xf32> to vector<128xf32>
    %44 = vector.shape_cast %43 : vector<128xf32> to vector<128x1xf32>
    %cst_24 = arith.constant 3.200000e+01 : f32
    %45 = vector.broadcast %cst_24 : f32 to vector<128x1xf32>
    %46 = arith.divf %44, %45 : vector<128x1xf32>
    %cst_25 = arith.constant 9.99999974E-6 : f32
    %47 = vector.broadcast %cst_25 : f32 to vector<128x1xf32>
    %48 = arith.addf %46, %47 : vector<128x1xf32>
    %49 = math.rsqrt %48 : vector<128x1xf32>
    %50 = vector.broadcast %49 : vector<128x1xf32> to vector<128x32xf32>
    %51 = arith.mulf %41, %50 : vector<128x32xf32>
    %52 = vector.broadcast %6 : vector<1x32xf32> to vector<128x32xf32>
    %53 = arith.mulf %51, %52 : vector<128x32xf32>
    %54 = vector.broadcast %7 : vector<1x32xf32> to vector<128x32xf32>
    %55 = arith.addf %53, %54 : vector<128x32xf32>
    %56 = arith.truncf %55 : vector<128x32xf32> to vector<128x32xbf16>
    %c0_26 = arith.constant 0 : index
    %c0_27 = arith.constant 0 : index
    %c0_28 = arith.constant 0 : index
    %57 = vector.load %arg4[%c0_26, %c0_27, %c0_28] : memref<4x32x32xbf16, #tpu.memory_space<vmem>>, vector<1x32x32xbf16>
    %58 = vector.shape_cast %57 : vector<1x32x32xbf16> to vector<32x32xbf16>
    %c1_29 = arith.constant 1 : index
    %c0_30 = arith.constant 0 : index
    %c0_31 = arith.constant 0 : index
    %59 = vector.load %arg4[%c1_29, %c0_30, %c0_31] : memref<4x32x32xbf16, #tpu.memory_space<vmem>>, vector<1x32x32xbf16>
    %60 = vector.shape_cast %59 : vector<1x32x32xbf16> to vector<32x32xbf16>
    %c2_32 = arith.constant 2 : index
    %c0_33 = arith.constant 0 : index
    %c0_34 = arith.constant 0 : index
    %61 = vector.load %arg4[%c2_32, %c0_33, %c0_34] : memref<4x32x32xbf16, #tpu.memory_space<vmem>>, vector<1x32x32xbf16>
    %62 = vector.shape_cast %61 : vector<1x32x32xbf16> to vector<32x32xbf16>
    %c3_35 = arith.constant 3 : index
    %c0_36 = arith.constant 0 : index
    %c0_37 = arith.constant 0 : index
    %63 = vector.load %arg4[%c3_35, %c0_36, %c0_37] : memref<4x32x32xbf16, #tpu.memory_space<vmem>>, vector<1x32x32xbf16>
    %64 = vector.shape_cast %63 : vector<1x32x32xbf16> to vector<32x32xbf16>
    %cst_38 = arith.constant dense<0.000000e+00> : vector<128x32xf32>
    %65 = tpu.matmul %35, %58, %cst_38 {dimension_numbers = #tpu.dot_dimension_numbers<[1], [0], [0], [1], [0, 0, 1, 1], [], []>} : vector<128x32xbf16>, vector<32x32xbf16>, vector<128x32xf32> -> vector<128x32xf32>
    %66 = vector.broadcast %10 : vector<1x32xf32> to vector<128x32xf32>
    %67 = arith.addf %65, %66 : vector<128x32xf32>
    %cst_39 = arith.constant dense<0.000000e+00> : vector<128x32xf32>
    %68 = tpu.matmul %56, %60, %cst_39 {dimension_numbers = #tpu.dot_dimension_numbers<[1], [0], [0], [1], [0, 0, 1, 1], [], []>} : vector<128x32xbf16>, vector<32x32xbf16>, vector<128x32xf32> -> vector<128x32xf32>
    %69 = vector.broadcast %11 : vector<1x32xf32> to vector<128x32xf32>
    %70 = arith.addf %68, %69 : vector<128x32xf32>
    %cst_40 = arith.constant dense<0.000000e+00> : vector<128x32xf32>
    %71 = tpu.matmul %56, %62, %cst_40 {dimension_numbers = #tpu.dot_dimension_numbers<[1], [0], [0], [1], [0, 0, 1, 1], [], []>} : vector<128x32xbf16>, vector<32x32xbf16>, vector<128x32xf32> -> vector<128x32xf32>
    %72 = vector.broadcast %12 : vector<1x32xf32> to vector<128x32xf32>
    %73 = arith.addf %71, %72 : vector<128x32xf32>
    %74 = arith.truncf %67 : vector<128x32xf32> to vector<128x32xbf16>
    %75 = vector.shape_cast %74 : vector<128x32xbf16> to vector<2x64x32xbf16>
    %76 = arith.truncf %70 : vector<128x32xf32> to vector<128x32xbf16>
    %77 = vector.shape_cast %76 : vector<128x32xbf16> to vector<2x64x32xbf16>
    %78 = arith.truncf %73 : vector<128x32xf32> to vector<128x32xbf16>
    %79 = vector.shape_cast %78 : vector<128x32xbf16> to vector<2x64x32xbf16>
    %cst_41 = arith.constant dense<0.000000e+00> : vector<2x64x64xf32>
    %80 = tpu.matmul %75, %77, %cst_41 {dimension_numbers = #tpu.dot_dimension_numbers<[2], [2], [1], [1], [0, 0, 0, 1, 1, 1], [0], [0]>} : vector<2x64x32xbf16>, vector<2x64x32xbf16>, vector<2x64x64xf32> -> vector<2x64x64xf32>
    %cst_42 = arith.constant dense<0xFF800000> : vector<2x64xf32>
    %81 = vector.multi_reduction <maximumf>, %80, %cst_42 [2] : vector<2x64x64xf32> to vector<2x64xf32>
    %82 = vector.shape_cast %81 : vector<2x64xf32> to vector<2x64x1xf32>
    %83 = vector.broadcast %82 : vector<2x64x1xf32> to vector<2x64x64xf32>
    %84 = arith.subf %80, %83 : vector<2x64x64xf32>
    %85 = math.exp %84 : vector<2x64x64xf32>
    %cst_43 = arith.constant dense<0.000000e+00> : vector<2x64xf32>
    %86 = vector.multi_reduction <add>, %85, %cst_43 [2] : vector<2x64x64xf32> to vector<2x64xf32>
    %87 = vector.shape_cast %86 : vector<2x64xf32> to vector<2x64x1xf32>
    %88 = tpu.reciprocal %87 {approx = true} : vector<2x64x1xf32> -> vector<2x64x1xf32>
    %89 = vector.broadcast %88 : vector<2x64x1xf32> to vector<2x64x64xf32>
    %90 = arith.mulf %85, %89 : vector<2x64x64xf32>
    %91 = arith.truncf %90 : vector<2x64x64xf32> to vector<2x64x64xbf16>
    %cst_44 = arith.constant dense<0.000000e+00> : vector<2x64x32xf32>
    %92 = tpu.matmul %91, %79, %cst_44 {dimension_numbers = #tpu.dot_dimension_numbers<[2], [1], [1], [2], [0, 0, 0, 1, 1, 2], [0], [0]>} : vector<2x64x64xbf16>, vector<2x64x32xbf16>, vector<2x64x32xf32> -> vector<2x64x32xf32>
    %93 = vector.shape_cast %92 : vector<2x64x32xf32> to vector<128x32xf32>
    %94 = arith.truncf %93 : vector<128x32xf32> to vector<128x32xbf16>
    %cst_45 = arith.constant dense<0.000000e+00> : vector<128x32xf32>
    %95 = tpu.matmul %94, %64, %cst_45 {dimension_numbers = #tpu.dot_dimension_numbers<[1], [0], [0], [1], [0, 0, 1, 1], [], []>} : vector<128x32xbf16>, vector<32x32xbf16>, vector<128x32xf32> -> vector<128x32xf32>
    %96 = vector.broadcast %13 : vector<1x32xf32> to vector<128x32xf32>
    %97 = arith.addf %95, %96 : vector<128x32xf32>
    %98 = arith.addf %1, %97 : vector<128x32xf32>
    %cst_46 = arith.constant dense<0.000000e+00> : vector<128xf32>
    %99 = vector.multi_reduction <add>, %98, %cst_46 [1] : vector<128x32xf32> to vector<128xf32>
    %100 = vector.shape_cast %99 : vector<128xf32> to vector<128x1xf32>
    %cst_47 = arith.constant 3.200000e+01 : f32
    %101 = vector.broadcast %cst_47 : f32 to vector<128x1xf32>
    %102 = arith.divf %100, %101 : vector<128x1xf32>
    %103 = vector.broadcast %102 : vector<128x1xf32> to vector<128x32xf32>
    %104 = arith.subf %98, %103 : vector<128x32xf32>
    %105 = arith.mulf %104, %104 : vector<128x32xf32>
    %cst_48 = arith.constant dense<0.000000e+00> : vector<128xf32>
    %106 = vector.multi_reduction <add>, %105, %cst_48 [1] : vector<128x32xf32> to vector<128xf32>
    %107 = vector.shape_cast %106 : vector<128xf32> to vector<128x1xf32>
    %cst_49 = arith.constant 3.200000e+01 : f32
    %108 = vector.broadcast %cst_49 : f32 to vector<128x1xf32>
    %109 = arith.divf %107, %108 : vector<128x1xf32>
    %cst_50 = arith.constant 9.99999974E-6 : f32
    %110 = vector.broadcast %cst_50 : f32 to vector<128x1xf32>
    %111 = arith.addf %109, %110 : vector<128x1xf32>
    %112 = math.rsqrt %111 : vector<128x1xf32>
    %113 = vector.broadcast %112 : vector<128x1xf32> to vector<128x32xf32>
    %114 = arith.mulf %104, %113 : vector<128x32xf32>
    %115 = vector.broadcast %8 : vector<1x32xf32> to vector<128x32xf32>
    %116 = arith.mulf %114, %115 : vector<128x32xf32>
    %117 = vector.broadcast %9 : vector<1x32xf32> to vector<128x32xf32>
    %118 = arith.addf %116, %117 : vector<128x32xf32>
    %119 = arith.truncf %118 : vector<128x32xf32> to vector<128x32xbf16>
    %c0_51 = arith.constant 0 : index
    %c0_52 = arith.constant 0 : index
    %120 = vector.load %arg6[%c0_51, %c0_52] : memref<32x128xbf16, #tpu.memory_space<vmem>>, vector<32x128xbf16>
    %cst_53 = arith.constant dense<0.000000e+00> : vector<128x128xf32>
    %121 = tpu.matmul %119, %120, %cst_53 {dimension_numbers = #tpu.dot_dimension_numbers<[1], [0], [0], [1], [0, 0, 1, 1], [], []>} : vector<128x32xbf16>, vector<32x128xbf16>, vector<128x128xf32> -> vector<128x128xf32>
    %c0_54 = arith.constant 0 : index
    %c0_55 = arith.constant 0 : index
    %122 = vector.load %arg5[%c0_54, %c0_55] : memref<1x128xf32, #tpu.memory_space<vmem>>, vector<1x128xf32>
    %123 = vector.broadcast %122 : vector<1x128xf32> to vector<128x128xf32>
    %124 = arith.addf %121, %123 : vector<128x128xf32>
    %cst_56 = arith.constant 5.000000e-01 : f32
    %125 = vector.broadcast %cst_56 : f32 to vector<128x128xf32>
    %126 = arith.mulf %125, %124 : vector<128x128xf32>
    %cst_57 = arith.constant 2.000000e+00 : f32
    %127 = math.sqrt %cst_57 : f32
    %cst_58 = arith.constant 1.000000e+00 : f32
    %128 = arith.divf %cst_58, %127 : f32
    %129 = vector.broadcast %128 : f32 to vector<128x128xf32>
    %130 = arith.mulf %124, %129 : vector<128x128xf32>
    %131 = math.erf %130 : vector<128x128xf32>
    %cst_59 = arith.constant 1.000000e+00 : f32
    %132 = vector.broadcast %cst_59 : f32 to vector<128x128xf32>
    %133 = arith.addf %132, %131 : vector<128x128xf32>
    %134 = arith.mulf %126, %133 : vector<128x128xf32>
    %135 = arith.truncf %134 : vector<128x128xf32> to vector<128x128xbf16>
    %c0_60 = arith.constant 0 : index
    %c0_61 = arith.constant 0 : index
    %136 = vector.load %arg7[%c0_60, %c0_61] : memref<128x32xbf16, #tpu.memory_space<vmem>>, vector<128x32xbf16>
    %cst_62 = arith.constant dense<0.000000e+00> : vector<128x32xf32>
    %137 = tpu.matmul %135, %136, %cst_62 {dimension_numbers = #tpu.dot_dimension_numbers<[1], [0], [0], [1], [0, 0, 1, 1], [], []>} : vector<128x128xbf16>, vector<128x32xbf16>, vector<128x32xf32> -> vector<128x32xf32>
    %138 = vector.broadcast %14 : vector<1x32xf32> to vector<128x32xf32>
    %139 = arith.addf %137, %138 : vector<128x32xf32>
    %140 = arith.addf %98, %139 : vector<128x32xf32>
    %141 = vector.shape_cast %140 : vector<128x32xf32> to vector<2x64x32xf32>
    %c0_63 = arith.constant 0 : index
    %c0_64 = arith.constant 0 : index
    %c0_65 = arith.constant 0 : index
    %142 = vector.load %arg8[%c0_63, %c0_64, %c0_65] : memref<2x64x32xf32, #tpu.memory_space<vmem>>, vector<2x64x32xf32>
    tpu.vector_store %arg8[%c0_63, %c0_64, %c0_65], %141 {strides = array<i32>} : memref<2x64x32xf32, #tpu.memory_space<vmem>>, vector<2x64x32xf32>,
    return
  }
  func.func @transform_0(%arg0: i32) -> (i32, i32, i32) {
    %c0_i32 = arith.constant 0 : i32
    %c0_i32_0 = arith.constant 0 : i32
    %c0_i32_1 = arith.constant 0 : i32
    return %arg0, %c0_i32, %c0_i32_0 : i32, i32, i32
  }
  func.func @transform_1(%arg0: i32) -> (i32, i32, i32) {
    %c0_i32 = arith.constant 0 : i32
    %c0_i32_0 = arith.constant 0 : i32
    %c0_i32_1 = arith.constant 0 : i32
    return %arg0, %c0_i32, %c0_i32_0 : i32, i32, i32
  }
  func.func @transform_2(%arg0: i32) -> (i32, i32) {
    %c0_i32 = arith.constant 0 : i32
    %c0_i32_0 = arith.constant 0 : i32
    %c0_i32_1 = arith.constant 0 : i32
    return %c0_i32, %c0_i32_0 : i32, i32
  }
  func.func @transform_3(%arg0: i32) -> (i32, i32, i32) {
    %c0_i32 = arith.constant 0 : i32
    %c0_i32_0 = arith.constant 0 : i32
    %c0_i32_1 = arith.constant 0 : i32
    %c0_i32_2 = arith.constant 0 : i32
    return %c0_i32, %c0_i32_0, %c0_i32_1 : i32, i32, i32
  }
  func.func @transform_4(%arg0: i32) -> (i32, i32) {
    %c0_i32 = arith.constant 0 : i32
    %c0_i32_0 = arith.constant 0 : i32
    %c0_i32_1 = arith.constant 0 : i32
    return %c0_i32, %c0_i32_0 : i32, i32
  }
  func.func @transform_5(%arg0: i32) -> (i32, i32) {
    %c0_i32 = arith.constant 0 : i32
    %c0_i32_0 = arith.constant 0 : i32
    %c0_i32_1 = arith.constant 0 : i32
    return %c0_i32, %c0_i32_0 : i32, i32
  }
  func.func @transform_6(%arg0: i32) -> (i32, i32) {
    %c0_i32 = arith.constant 0 : i32
    %c0_i32_0 = arith.constant 0 : i32
    %c0_i32_1 = arith.constant 0 : i32
    return %c0_i32, %c0_i32_0 : i32, i32
  }
  func.func @transform_7(%arg0: i32) -> (i32, i32, i32) {
    %c0_i32 = arith.constant 0 : i32
    %c0_i32_0 = arith.constant 0 : i32
    %c0_i32_1 = arith.constant 0 : i32
    return %arg0, %c0_i32, %c0_i32_0 : i32, i32, i32
  }
}

</mosaic_0001>

<bundles_post_ra>
// kernel: tpu_custom_call.1
= control target key start
LH: loop header
LB: loop body
LE: loop exit
PB: predicated region body
PF: predicated region fallthrough
CT: control target
= control target key end

     0   :  { %12 = vsyncpa [#allocation3], 0  ;;  %s4521_s0 = inlined_call_operand.hbm [shape: f32[2,64,32], index: 0, kind: input, shape index: {}]   ;;  %s4522_s1 = inlined_call_operand.hbm [shape: f32[2,64,32], index: 1, kind: input, shape index: {}]   ;;  %s4523_s2 = inlined_call_operand.hbm [shape: f32[11,32], index: 2, kind: input, shape index: {}]   ;;  %s4524_s3 = inlined_call_operand.hbm [shape: bf16[4,32,32], index: 3, kind: input, shape index: {}]   ;;  %s4525_s4 = inlined_call_operand.hbm [shape: f32[1,128], index: 4, kind: input, shape index: {}]   ;;  %s4526_s5 = inlined_call_operand.hbm [shape: bf16[32,128], index: 5, kind: input, shape index: {}]   ;;  %s4527_s6 = inlined_call_operand.hbm [shape: bf16[128,32], index: 6, kind: input, shape index: {}]   ;;  %s4528_s7 = inlined_call_operand.hbm [shape: f32[2,64,32], index: 7, kind: output, shape index: {}]  }
   0x1   :  { %13 = vsyncpa [#allocation6], 0 }
   0x2   :  { %14 = vsyncpa [#allocation9], 0 }
   0x3   :  { %15 = vsyncpa [#allocation12], 0 }
   0x4   :  { %16 = vsyncpa [#allocation4], 0  ;;  %s3307_s24 = smov [#allocation5]   ;;  %s3308_s26 = smov [#allocation8]  }
   0x5   :  { %s34_s25 = sshll.u32 %s3307_s24, 4  ;;  %s58_s27 = sshll.u32 %s3308_s26, 4  ;;  %s35_s25 = int_to_ptr.vmem [resolvable:$true] %s34_s25  ;;  %s3359_s27 = int_to_ptr.vmem [resolvable:$true] %s58_s27 }
   0x6   :  { %s3121_s30 = scalar_lea.hbm %s4522_s1, 2048 }
   0x7   :  { %p3122_p0 = scmp.ne.s32.totalorder %s4522_s1, %s3121_s30  ;;  %p3125_p1 = scmp.lt.u32.totalorder %s3121_s30, %s4522_s1 }
   0x9   :  { %p3127_p2 = pnand %p3125_p1, %p3122_p0 }
   0xb   :  { %3130 = shalt.err (!%p3127_p2)
}
   0xc   :  { %s3131_s12 = scalar_lea.vmem %s35_s25, 2048  ;;  %p3136_p4 = scmp.lt.s32.totalorder %s35_s25, %s35_s25 }
   0xd   :  { %p3132_p3 = scmp.ne.s32.totalorder %s35_s25, %s3131_s12  ;;  %p3137_p5 = scmp.lt.s32.totalorder %s3131_s12, %s3131_s12 }
   0xf   :  { %p3138_p6 = por %p3137_p5, %p3136_p4 }
  0x11   :  { %p3139_p7 = pnand %p3138_p6, %p3132_p3 }
  0x13   :  { %3142 = shalt.err (!%p3139_p7)
}
  0x14   :  { %s3309_s13 = smov 128   ;;  %s3310_s14 = smov 8  }
  0x15   :  { %40 = dma.hbm_to_vmem [thread:$0]  %s4522_s1, 2048, %s35_s25, [#allocation6], %s3309_s13, %s3309_s13, %s3310_s14  }
  0x16   :  { %s3143_s19 = scalar_lea.hbm %s4524_s3, 1024 }
  0x17   :  { %p3144_p8 = scmp.ne.s32.totalorder %s4524_s3, %s3143_s19  ;;  %p3147_p9 = scmp.lt.u32.totalorder %s3143_s19, %s4524_s3 }
  0x19   :  { %p3149_p10 = pnand %p3147_p9, %p3144_p8 }
  0x1b   :  { %3152 = shalt.err (!%p3149_p10)
}
  0x1c   :  { %s3153_s24 = scalar_lea.vmem %s3359_s27, 1024  ;;  %p3158_p12 = scmp.lt.s32.totalorder %s3359_s27, %s3359_s27 }
  0x1d   :  { %p3154_p11 = scmp.ne.s32.totalorder %s3359_s27, %s3153_s24  ;;  %p3159_p13 = scmp.lt.s32.totalorder %s3153_s24, %s3153_s24 }
  0x1f   :  { %p3160_p0 = por %p3159_p13, %p3158_p12 }
  0x21   :  { %p3161_p1 = pnand %p3160_p0, %p3154_p11 }
  0x23   :  { %3164 = shalt.err (!%p3161_p1)
}
  0x24   :  { %s3311_s1 = smov 64   ;;  %s3312_s25 = smov 4  }
  0x25   :  { %64 = dma.hbm_to_vmem [thread:$0]  %s4524_s3, 1024, %s3359_s27, [#allocation9], %s3311_s1, %s3311_s1, %s3312_s25  }
  0x26   :  { %s3313_s29 = smov [#allocation11]   ;;  %s3314_s8 = smov [#allocation2]  }
  0x27   :  { %s80_s30 = sshll.u32 %s3313_s29, 4  ;;  %s22_s9 = sshll.u32 %s3314_s8, 4  ;;  %s81_s30 = int_to_ptr.vmem [resolvable:$true] %s80_s30  ;;  %s3396_s9 = int_to_ptr.vmem [resolvable:$true] %s22_s9 }
  0x28   :  { %s3165_s12 = scalar_lea.hbm %s4526_s5, 256 }
  0x29   :  { %p3166_p2 = scmp.ne.s32.totalorder %s4526_s5, %s3165_s12  ;;  %p3169_p3 = scmp.lt.u32.totalorder %s3165_s12, %s4526_s5 }
  0x2b   :  { %p3171_p4 = pnand %p3169_p3, %p3166_p2 }
  0x2d   :  { %3174 = shalt.err (!%p3171_p4)
}
  0x2e   :  { %s3175_s3 = scalar_lea.vmem %s81_s30, 256  ;;  %p3180_p6 = scmp.lt.s32.totalorder %s81_s30, %s81_s30 }
  0x2f   :  { %p3176_p5 = scmp.ne.s32.totalorder %s81_s30, %s3175_s3  ;;  %p3181_p7 = scmp.lt.s32.totalorder %s3175_s3, %s3175_s3 }
  0x31   :  { %p3182_p8 = por %p3181_p7, %p3180_p6 }
  0x33   :  { %p3183_p9 = pnand %p3182_p8, %p3176_p5 }
  0x35   :  { %3186 = shalt.err (!%p3183_p9)
}
  0x36   :  { %86 = dma.hbm_to_vmem [thread:$0]  %s4526_s5, 256, %s81_s30, [#allocation12], %s3311_s1, %s3311_s1, %s3312_s25  }
  0x37   :  { %s3187_s22 = scalar_lea.hbm %s4521_s0, 2048 }
  0x38   :  { %p3188_p10 = scmp.ne.s32.totalorder %s4521_s0, %s3187_s22  ;;  %p3191_p11 = scmp.lt.u32.totalorder %s3187_s22, %s4521_s0 }
  0x3a   :  { %p3193_p12 = pnand %p3191_p11, %p3188_p10 }
  0x3c   :  { %3196 = shalt.err (!%p3193_p12)
}
  0x3d   :  { %s3197_s29 = scalar_lea.vmem %s3396_s9, 2048  ;;  %p3202_p0 = scmp.lt.s32.totalorder %s3396_s9, %s3396_s9 }
  0x3e   :  { %p3198_p13 = scmp.ne.s32.totalorder %s3396_s9, %s3197_s29  ;;  %p3203_p1 = scmp.lt.s32.totalorder %s3197_s29, %s3197_s29 }
  0x40   :  { %p3204_p2 = por %p3203_p1, %p3202_p0 }
  0x42   :  { %p3205_p3 = pnand %p3204_p2, %p3198_p13 }
  0x44   :  { %3208 = shalt.err (!%p3205_p3)
}
  0x45   :  { %28 = dma.hbm_to_vmem [thread:$0]  %s4521_s0, 2048, %s3396_s9, [#allocation3], %s3309_s13, %s3309_s13, %s3310_s14  }
  0x46   :  { %s3315_s8 = smov [#allocation7]   ;;  %s3316_s11 = smov [#allocation10]  }
  0x47   :  { %s46_s10 = sshll.u32 %s3315_s8, 4  ;;  %s71_s12 = sshll.u32 %s3316_s11, 4  ;;  %s47_s10 = int_to_ptr.vmem [resolvable:$true] %s46_s10  ;;  %s72_s12 = int_to_ptr.vmem [resolvable:$true] %s71_s12 }
  0x48   :  { %s3209_s17 = scalar_lea.hbm %s4523_s2, 256 }
  0x49   :  { %p3210_p4 = scmp.ne.s32.totalorder %s4523_s2, %s3209_s17  ;;  %p3213_p5 = scmp.lt.u32.totalorder %s3209_s17, %s4523_s2 }
  0x4b   :  { %p3215_p6 = pnand %p3213_p5, %p3210_p4 }
  0x4d   :  { %3218 = shalt.err (!%p3215_p6)
}
  0x4e   :  { %s3219_s0 = scalar_lea.vmem %s47_s10, 256  ;;  %p3224_p8 = scmp.lt.s32.totalorder %s47_s10, %s47_s10 }
  0x4f   :  { %p3220_p7 = scmp.ne.s32.totalorder %s47_s10, %s3219_s0  ;;  %p3225_p9 = scmp.lt.s32.totalorder %s3219_s0, %s3219_s0 }
  0x51   :  { %p3226_p10 = por %p3225_p9, %p3224_p8 }
  0x53   :  { %p3227_p11 = pnand %p3226_p10, %p3220_p7 }
  0x55   :  { %3230 = shalt.err (!%p3227_p11)
}
  0x56   :  { %52 = dma.hbm_to_vmem [thread:$0]  %s4523_s2, 256, %s47_s10, [#allocation6], %s3309_s13, %s3309_s13, %s3310_s14  }
  0x57   :  { %s3231_s23 = scalar_lea.hbm %s4525_s4, 16 }
  0x58   :  { %p3232_p12 = scmp.ne.s32.totalorder %s4525_s4, %s3231_s23  ;;  %p3235_p13 = scmp.lt.u32.totalorder %s3231_s23, %s4525_s4 }
  0x5a   :  { %p3237_p0 = pnand %p3235_p13, %p3232_p12 }
  0x5c   :  { %3240 = shalt.err (!%p3237_p0)
}
  0x5d   :  { %s3241_s5 = scalar_lea.vmem %s72_s12, 16  ;;  %s3245_s30 = scalar_lea.vmem %s72_s12, 32 }
  0x5e   :  { %p3242_p1 = scmp.ne.s32.totalorder %s72_s12, %s3241_s5  ;;  %p3246_p2 = scmp.lt.s32.totalorder %s72_s12, %s72_s12 }
  0x5f   :  { %p3247_p3 = scmp.lt.s32.totalorder %s3245_s30, %s3241_s5 }
  0x61   :  { %p3248_p4 = por %p3247_p3, %p3246_p2 }
  0x63   :  { %p3249_p5 = pnand %p3248_p4, %p3242_p1 }
  0x65   :  { %3252 = shalt.err (!%p3249_p5)
}
  0x66   :  { %74 = dma.hbm_to_vmem [thread:$0]  %s4525_s4, 16, %s72_s12, [#allocation9]  }
  0x67   :  { %s3317_s10 = smov [#allocation13]   ;;  %s3253_s17 = scalar_lea.hbm %s4527_s6, 1024 }
  0x68   :  { %s92_s11 = sshll.u32 %s3317_s10, 4  ;;  %p3254_p6 = scmp.ne.s32.totalorder %s4527_s6, %s3253_s17  ;;  %s93_s11 = int_to_ptr.vmem [resolvable:$true] %s92_s11 }
  0x69   :  { %p3257_p7 = scmp.lt.u32.totalorder %s3253_s17, %s4527_s6 }
  0x6b   :  { %p3259_p8 = pnand %p3257_p7, %p3254_p6 }
  0x6d   :  { %3262 = shalt.err (!%p3259_p8)
}
  0x6e   :  { %s3263_s0 = scalar_lea.vmem %s93_s11, 1024  ;;  %p3268_p10 = scmp.lt.s32.totalorder %s93_s11, %s93_s11 }
  0x6f   :  { %p3264_p9 = scmp.ne.s32.totalorder %s93_s11, %s3263_s0  ;;  %p3269_p11 = scmp.lt.s32.totalorder %s3263_s0, %s3263_s0 }
  0x71   :  { %p3270_p12 = por %p3269_p11, %p3268_p10 }
  0x73   :  { %p3271_p13 = pnand %p3270_p12, %p3264_p9 }
  0x75   :  { %3274 = shalt.err (!%p3271_p13)
}
  0x76   :  { %98 = dma.hbm_to_vmem [thread:$0]  %s4527_s6, 1024, %s93_s11, [#allocation12], %s3311_s1, %s3311_s1, %s3312_s25  }
  0x77   :  { %3297 = dma.done.wait [#allocation3], 2048  }
  0x78   :  { %3298 = vsyncadd [#allocation3], 4294965248 }
  0x79   :  { %3299 = dma.done.wait [#allocation6], 2304  }
  0x7a   :  { %3300 = vsyncadd [#allocation6], 4294964992 }
  0x7b   :  { %3301 = dma.done.wait [#allocation9], 1040  }
  0x7c   :  { %3302 = vsyncadd [#allocation9], 4294966256 }
  0x7d   :  { %3303 = dma.done.wait [#allocation12], 1280  }
  0x7e   :  { %3304 = vsyncadd [#allocation12], 4294966016  ;;  %vm164_vm0 = vcmask 261120   ;;  %v3475_v0 = vld [vmem:[#allocation2 + $0x40] sm:$0xff]  ;;  %v3477_v1 = vld [vmem:[#allocation2 + $0x50] sm:$0xff]  ;;  %vm1286_vm1 = vcmask 523264  }
  0x7f   :  { %v3479_v2 = vld [vmem:[#allocation2 + $0x48] sm:$0xff]  ;;  %v189_v3 = vsel %vm164_vm0, %v3475_v0, 0.0  ;;  %v195_v4 = vsel %vm164_vm0, %v3477_v1, 0.0  ;;  %v3485_v5 = vld [vmem:[#allocation2 + $0x58] sm:$0xff]  ;;  %v3491_v8 = vld [vmem:[#allocation2 + $0x60] sm:$0xff]  ;;  %s3318_s6 = smov [#allocation14]  }
  0x80   :  { %190 = vadd.xlane.f32.xlu0 %v189_v3  ;;  %196 = vadd.xlane.f32.xlu1 %v195_v4  ;;  %v192_v6 = vsel %vm164_vm0, %v3479_v2, 0.0  ;;  %v198_v7 = vsel %vm164_vm0, %v3485_v5, 0.0  ;;  %v3493_v9 = vld [vmem:[#allocation2 + $0x68] sm:$0xff]  ;;  %v3495_v10 = vld [vmem:[#allocation2 + $0x70] sm:$0xff]  ;;  %v201_v11 = vsel %vm164_vm0, %v3491_v8, 0.0  ;;  %v3501_v13 = vld [vmem:[#allocation2 + $0x78] sm:$0xff] }
  0x81   :  { %v204_v12 = vsel %vm164_vm0, %v3493_v9, 0.0  ;;  %v3503_v14 = vld [vmem:[#allocation5] sm:$0xff]  ;;  %v3505_v15 = vld [vmem:[#allocation5 + $0x8] sm:$0xff]  ;;  %v3507_v16 = vld [vmem:[#allocation5 + $0x10] sm:$0xff]  ;;  %v207_v18 = vsel %vm164_vm0, %v3495_v10, 0.0  ;;  %v210_v19 = vsel %vm164_vm0, %v3501_v13, 0.0 }
  0x82   :  { %v3509_v17 = vld [vmem:[#allocation5 + $0x18] sm:$0xff]  ;;  %v422_v20 = vsel %vm164_vm0, %v3503_v14, 0.0  ;;  %v425_v21 = vsel %vm164_vm0, %v3505_v15, 0.0  ;;  %v428_v22 = vsel %vm164_vm0, %v3507_v16, 0.0  ;;  %v3523_v24 = vld [vmem:[#allocation5 + $0x20] sm:$0xff]  ;;  %v3525_v25 = vld [vmem:[#allocation5 + $0x28] sm:$0xff] }
  0x83   :  { %v431_v23 = vsel %vm164_vm0, %v3509_v17, 0.0  ;;  %v434_v26 = vsel %vm164_vm0, %v3523_v24, 0.0  ;;  %v437_v27 = vsel %vm164_vm0, %v3525_v25, 0.0  ;;  %v3531_v28 = vld [vmem:[#allocation5 + $0x30] sm:$0xff]  ;;  %v3533_v29 = vld [vmem:[#allocation5 + $0x38] sm:$0xff]  ;;  %v3539_v32 = vld [vmem:[#allocation5 + $0x40] sm:$0xff] }
  0x84   :  { %193 = vadd.xlane.f32.xlu0 %v192_v6  ;;  %199 = vadd.xlane.f32.xlu1 %v198_v7  ;;  %v440_v30 = vsel %vm164_vm0, %v3531_v28, 0.0  ;;  %v443_v31 = vsel %vm164_vm0, %v3533_v29, 0.0  ;;  %v3541_v33 = vld [vmem:[#allocation5 + $0x48] sm:$0xff]  ;;  %v446_v34 = vsel %vm164_vm0, %v3539_v32, 0.0  ;;  %v3547_v36 = vld [vmem:[#allocation5 + $0x50] sm:$0xff]  ;;  %v3549_v37 = vld [vmem:[#allocation5 + $0x58] sm:$0xff] }
  0x85   :  { %v449_v35 = vsel %vm164_vm0, %v3541_v33, 0.0  ;;  %v452_v38 = vsel %vm164_vm0, %v3547_v36, 0.0  ;;  %v455_v39 = vsel %vm164_vm0, %v3549_v37, 0.0  ;;  %v3555_v40 = vld [vmem:[#allocation2] sm:$0xff]  ;;  %v3557_v41 = vld [vmem:[#allocation2 + $0x8] sm:$0xff]  ;;  %v3563_v44 = vld [vmem:[#allocation2 + $0x10] sm:$0xff] }
  0x86   :  { %v165_v42 = vsel %vm164_vm0, %v3555_v40, 0.0  ;;  %v168_v43 = vsel %vm164_vm0, %v3557_v41, 0.0  ;;  %v3565_v45 = vld [vmem:[#allocation2 + $0x18] sm:$0xff]  ;;  %v171_v46 = vsel %vm164_vm0, %v3563_v44, 0.0  ;;  %v3571_v48 = vld [vmem:[#allocation5 + $0x60] sm:$0xff]  ;;  %v3573_v49 = vld [vmem:[#allocation5 + $0x68] sm:$0xff] }
  0x87   :  { %v174_v47 = vsel %vm164_vm0, %v3565_v45, 0.0  ;;  %v458_v50 = vsel %vm164_vm0, %v3571_v48, 0.0  ;;  %v461_v51 = vsel %vm164_vm0, %v3573_v49, 0.0  ;;  %v3579_v52 = vld [vmem:[#allocation5 + $0x70] sm:$0xff]  ;;  %v3581_v53 = vld [vmem:[#allocation5 + $0x78] sm:$0xff]  ;;  %v3587_v56 = vld [vmem:[#allocation2 + $0x20] sm:$0xff] }
  0x88   :  { %202 = vadd.xlane.f32.xlu0 %v201_v11  ;;  %205 = vadd.xlane.f32.xlu1 %v204_v12  ;;  %v464_v54 = vsel %vm164_vm0, %v3579_v52, 0.0  ;;  %v467_v55 = vsel %vm164_vm0, %v3581_v53, 0.0  ;;  %v3589_v57 = vld [vmem:[#allocation2 + $0x28] sm:$0xff]  ;;  %v177_v58 = vsel %vm164_vm0, %v3587_v56, 0.0  ;;  %v3595_v60 = vld [vmem:[#allocation2 + $0x30] sm:$0xff]  ;;  %v3597_v61 = vld [vmem:[#allocation2 + $0x38] sm:$0xff] }
  0x89   :  { %v180_v59 = vsel %vm164_vm0, %v3589_v57, 0.0  ;;  %v183_v62 = vsel %vm164_vm0, %v3595_v60, 0.0  ;;  %v186_v63 = vsel %vm164_vm0, %v3597_v61, 0.0  ;;  %s2476_s1 = sshll.u32 %s3318_s6, 4  ;;  %s2477_s1 = int_to_ptr.vmem [resolvable:$true] %s2476_s1 }
  0x8a   :  { %s3275_s25 = scalar_lea.vmem %s2477_s1, 2048  ;;  %p3280_p1 = scmp.lt.s32.totalorder %s2477_s1, %s2477_s1 }
  0x8b   :  { %p3276_p0 = scmp.ne.s32.totalorder %s2477_s1, %s3275_s25  ;;  %p3281_p2 = scmp.lt.s32.totalorder %s3275_s25, %s3275_s25 }
  0x8c   :  { %208 = vadd.xlane.f32.xlu0 %v207_v18  ;;  %211 = vadd.xlane.f32.xlu1 %v210_v19 }
  0x8d   :  { %p3282_p3 = por %p3281_p2, %p3280_p1 }
  0x8f   :  { %p3283_p4 = pnand %p3282_p3, %p3276_p0 }
  0x90   :  { %423 = vadd.xlane.f32.xlu0 %v422_v20  ;;  %426 = vadd.xlane.f32.xlu1 %v425_v21 }
  0x94   :  { %429 = vadd.xlane.f32.xlu0 %v428_v22  ;;  %432 = vadd.xlane.f32.xlu1 %v431_v23 }
  0x98   :  { %435 = vadd.xlane.f32.xlu0 %v434_v26  ;;  %438 = vadd.xlane.f32.xlu1 %v437_v27 }
  0x9c   :  { %441 = vadd.xlane.f32.xlu0 %v440_v30  ;;  %444 = vadd.xlane.f32.xlu1 %v443_v31 }
  0xa0   :  { %447 = vadd.xlane.f32.xlu0 %v446_v34  ;;  %450 = vadd.xlane.f32.xlu1 %v449_v35 }
  0xa4   :  { %453 = vadd.xlane.f32.xlu0 %v452_v38  ;;  %456 = vadd.xlane.f32.xlu1 %v455_v39 }
  0xa8   :  { %166 = vadd.xlane.f32.xlu0 %v165_v42  ;;  %169 = vadd.xlane.f32.xlu1 %v168_v43 }
  0xac   :  { %172 = vadd.xlane.f32.xlu0 %v171_v46  ;;  %175 = vadd.xlane.f32.xlu1 %v174_v47 }
  0xb0   :  { %459 = vadd.xlane.f32.xlu0 %v458_v50  ;;  %462 = vadd.xlane.f32.xlu1 %v461_v51 }
  0xb4   :  { %465 = vadd.xlane.f32.xlu0 %v464_v54  ;;  %468 = vadd.xlane.f32.xlu1 %v467_v55 }
  0xb8   :  { %178 = vadd.xlane.f32.xlu0 %v177_v58  ;;  %181 = vadd.xlane.f32.xlu1 %v180_v59 }
  0xbc   :  { %184 = vadd.xlane.f32.xlu0 %v183_v62  ;;  %187 = vadd.xlane.f32.xlu1 %v186_v63 }
 0x10d   :  { %v191_v3 = vpop.xlane.xlu0 %190  ;;  %v197_v4 = vpop.xlane.xlu1 %196 }
 0x10e   :  { %v222_v6 = vmul.f32 0.03125, %v191_v3  ;;  %v224_v7 = vmul.f32 0.03125, %v197_v4 }
 0x110   :  { %v3604_v11 = vsub.f32 %v3475_v0, %v222_v6  ;;  %v3607_v12 = vsub.f32 %v3477_v1, %v224_v7 }
 0x111   :  { %v194_v18 = vpop.xlane.xlu0 %193  ;;  %v200_v19 = vpop.xlane.xlu1 %199 }
 0x112   :  { %v223_v20 = vmul.f32 0.03125, %v194_v18  ;;  %v225_v21 = vmul.f32 0.03125, %v200_v19  ;;  %v254_v22 = vmul.f32 %v3604_v11, %v3604_v11  ;;  %v256_v23 = vmul.f32 %v3607_v12, %v3607_v12 }
 0x114   :  { %v3614_v26 = vsub.f32 %v3479_v2, %v223_v20  ;;  %v3617_v27 = vsub.f32 %v3485_v5, %v225_v21  ;;  %v286_v0 = vsel %vm164_vm0, %v254_v22, 0.0  ;;  %v292_v31 = vsel %vm164_vm0, %v256_v23, 0.0 }
 0x115   :  { %v203_v1 = vpop.xlane.xlu0 %202  ;;  %287 = vadd.xlane.f32.xlu0 %v286_v0  ;;  %v206_v30 = vpop.xlane.xlu1 %205 }
 0x116   :  { %v226_v34 = vmul.f32 0.03125, %v203_v1  ;;  %v227_v35 = vmul.f32 0.03125, %v206_v30  ;;  %v255_v38 = vmul.f32 %v3614_v26, %v3614_v26  ;;  %v257_v39 = vmul.f32 %v3617_v27, %v3617_v27 }
 0x118   :  { %v3626_v2 = vsub.f32 %v3491_v8, %v226_v34  ;;  %v3629_v5 = vsub.f32 %v3493_v9, %v227_v35  ;;  %v289_v42 = vsel %vm164_vm0, %v255_v38, 0.0  ;;  %v295_v47 = vsel %vm164_vm0, %v257_v39, 0.0 }
 0x119   :  { %v209_v43 = vpop.xlane.xlu0 %208  ;;  %290 = vadd.xlane.f32.xlu1 %v289_v42  ;;  %293 = vadd.xlane.f32.xlu0 %v292_v31  ;;  %v212_v46 = vpop.xlane.xlu1 %211 }
 0x11a   :  { %v228_v50 = vmul.f32 0.03125, %v209_v43  ;;  %v229_v51 = vmul.f32 0.03125, %v212_v46  ;;  %v258_v54 = vmul.f32 %v3626_v2, %v3626_v2  ;;  %v259_v8 = vmul.f32 %v3629_v5, %v3629_v5 }
 0x11c   :  { %v3638_v55 = vsub.f32 %v3495_v10, %v228_v50  ;;  %v3641_v9 = vsub.f32 %v3501_v13, %v229_v51  ;;  %v298_v58 = vsel %vm164_vm0, %v258_v54, 0.0  ;;  %v301_v63 = vsel %vm164_vm0, %v259_v8, 0.0 }
 0x11d   :  { %v424_v59 = vpop.xlane.xlu0 %423  ;;  %296 = vadd.xlane.f32.xlu1 %v295_v47  ;;  %299 = vadd.xlane.f32.xlu0 %v298_v58  ;;  %v427_v62 = vpop.xlane.xlu1 %426 }
 0x11e   :  { %v470_v3 = vmul.f32 0.03125, %v424_v59  ;;  %v471_v4 = vmul.f32 0.03125, %v427_v62  ;;  %v260_v6 = vmul.f32 %v3638_v55, %v3638_v55  ;;  %v261_v10 = vmul.f32 %v3641_v9, %v3641_v9 }
 0x120   :  { %v3650_v7 = vsub.f32 %v3503_v14, %v470_v3  ;;  %v3653_v13 = vsub.f32 %v3505_v15, %v471_v4  ;;  %v304_v18 = vsel %vm164_vm0, %v260_v6, 0.0  ;;  %v307_v21 = vsel %vm164_vm0, %v261_v10, 0.0 }
 0x121   :  { %v430_v19 = vpop.xlane.xlu0 %429  ;;  %302 = vadd.xlane.f32.xlu1 %v301_v63  ;;  %305 = vadd.xlane.f32.xlu0 %v304_v18  ;;  %v433_v20 = vpop.xlane.xlu1 %432 }
 0x122   :  { %v472_v22 = vmul.f32 0.03125, %v430_v19  ;;  %v473_v23 = vmul.f32 0.03125, %v433_v20  ;;  %v502_v0 = vmul.f32 %v3650_v7, %v3650_v7  ;;  %v503_v14 = vmul.f32 %v3653_v13, %v3653_v13 }
 0x124   :  { %v3662_v1 = vsub.f32 %v3507_v16, %v472_v22  ;;  %v3665_v15 = vsub.f32 %v3509_v17, %v473_v23  ;;  %v518_v30 = vsel %vm164_vm0, %v502_v0, 0.0  ;;  %v521_v35 = vsel %vm164_vm0, %v503_v14, 0.0 }
 0x125   :  { %v436_v31 = vpop.xlane.xlu0 %435  ;;  %308 = vadd.xlane.f32.xlu1 %v307_v21  ;;  %519 = vadd.xlane.f32.xlu0 %v518_v30  ;;  %v439_v34 = vpop.xlane.xlu1 %438 }
 0x126   :  { %v474_v38 = vmul.f32 0.03125, %v436_v31  ;;  %v475_v39 = vmul.f32 0.03125, %v439_v34  ;;  %v504_v42 = vmul.f32 %v3662_v1, %v3662_v1  ;;  %v505_v16 = vmul.f32 %v3665_v15, %v3665_v15 }
 0x128   :  { %v3674_v43 = vsub.f32 %v3523_v24, %v474_v38  ;;  %v3677_v17 = vsub.f32 %v3525_v25, %v475_v39  ;;  %v524_v46 = vsel %vm164_vm0, %v504_v42, 0.0  ;;  %v527_v51 = vsel %vm164_vm0, %v505_v16, 0.0 }
 0x129   :  { %v442_v47 = vpop.xlane.xlu0 %441  ;;  %522 = vadd.xlane.f32.xlu1 %v521_v35  ;;  %525 = vadd.xlane.f32.xlu0 %v524_v46  ;;  %v445_v50 = vpop.xlane.xlu1 %444 }
 0x12a   :  { %v476_v54 = vmul.f32 0.03125, %v442_v47  ;;  %v477_v8 = vmul.f32 0.03125, %v445_v50  ;;  %v506_v58 = vmul.f32 %v3674_v43, %v3674_v43  ;;  %v507_v24 = vmul.f32 %v3677_v17, %v3677_v17 }
 0x12c   :  { %v3686_v59 = vsub.f32 %v3531_v28, %v476_v54  ;;  %v3689_v25 = vsub.f32 %v3533_v29, %v477_v8  ;;  %v530_v62 = vsel %vm164_vm0, %v506_v58, 0.0  ;;  %v533_v4 = vsel %vm164_vm0, %v507_v24, 0.0  ;;  %v2895_v58 = vld [vmem:[#allocation8] sm:$0xff]  }
 0x12d   :  { %v448_v63 = vpop.xlane.xlu0 %447  ;;  %528 = vadd.xlane.f32.xlu1 %v527_v51  ;;  %531 = vadd.xlane.f32.xlu0 %v530_v62  ;;  %v451_v3 = vpop.xlane.xlu1 %450 }
 0x12e   :  { %v478_v6 = vmul.f32 0.03125, %v448_v63  ;;  %v479_v10 = vmul.f32 0.03125, %v451_v3  ;;  %v508_v18 = vmul.f32 %v3686_v59, %v3686_v59  ;;  %v509_v28 = vmul.f32 %v3689_v25, %v3689_v25  ;;  %2871 = vmatprep.subr.bf16.mxu1 %v2895_v58  ;;  %2675 = vmatprep.subr.bf16.mxu0 %v2895_v58 }
 0x12f   :  { %2873 = vmatpush3.bf16.msra.mxu1 %v2895_v58  ;;  %2676 = vmatpush3.bf16.msra.mxu0 %v2895_v58 }
 0x130   :  { %v3698_v19 = vsub.f32 %v3539_v32, %v478_v6  ;;  %v3701_v29 = vsub.f32 %v3541_v33, %v479_v10  ;;  %v536_v20 = vsel %vm164_vm0, %v508_v18, 0.0  ;;  %v539_v23 = vsel %vm164_vm0, %v509_v28, 0.0  ;;  %v2896_v28 = vld [vmem:[#allocation8 + $0x8] sm:$0xff]  }
 0x131   :  { %v454_v21 = vpop.xlane.xlu0 %453  ;;  %534 = vadd.xlane.f32.xlu1 %v533_v4  ;;  %537 = vadd.xlane.f32.xlu0 %v536_v20  ;;  %v457_v22 = vpop.xlane.xlu1 %456 }
 0x132   :  { %v480_v0 = vmul.f32 0.03125, %v454_v21  ;;  %v481_v14 = vmul.f32 0.03125, %v457_v22  ;;  %v510_v30 = vmul.f32 %v3698_v19, %v3698_v19  ;;  %v511_v32 = vmul.f32 %v3701_v29, %v3701_v29  ;;  %2872 = vmatprep.subr.bf16.mxu1 %v2896_v28  ;;  %2677 = vmatprep.subr.bf16.mxu0 %v2896_v28 }
 0x133   :  { %2874 = vmatpush3.bf16.msra.mxu1 %v2896_v28  ;;  %2678 = vmatpush3.bf16.msra.mxu0 %v2896_v28 }
 0x134   :  { %v3710_v31 = vsub.f32 %v3547_v36, %v480_v0  ;;  %v3713_v33 = vsub.f32 %v3549_v37, %v481_v14  ;;  %v542_v34 = vsel %vm164_vm0, %v510_v30, 0.0  ;;  %v545_v38 = vsel %vm164_vm0, %v511_v32, 0.0 }
 0x135   :  { %540 = vadd.xlane.f32.xlu1 %v539_v23  ;;  %543 = vadd.xlane.f32.xlu0 %v542_v34  ;;  %v167_v35 = vpop.xlane.xlu0 %166  ;;  %v170_v39 = vpop.xlane.xlu1 %169 }
 0x136   :  { %v214_v42 = vmul.f32 0.03125, %v167_v35  ;;  %v215_v16 = vmul.f32 0.03125, %v170_v39  ;;  %v512_v46 = vmul.f32 %v3710_v31, %v3710_v31  ;;  %v513_v36 = vmul.f32 %v3713_v33, %v3713_v33 }
 0x138   :  { %v3722_v47 = vsub.f32 %v3555_v40, %v214_v42  ;;  %v3725_v37 = vsub.f32 %v3557_v41, %v215_v16  ;;  %v548_v50 = vsel %vm164_vm0, %v512_v46, 0.0  ;;  %v551_v54 = vsel %vm164_vm0, %v513_v36, 0.0 }
 0x139   :  { %546 = vadd.xlane.f32.xlu1 %v545_v38  ;;  %549 = vadd.xlane.f32.xlu0 %v548_v50  ;;  %v173_v51 = vpop.xlane.xlu0 %172  ;;  %v176_v8 = vpop.xlane.xlu1 %175 }
 0x13a   :  { %v216_v24 = vmul.f32 0.03125, %v173_v51  ;;  %v217_v62 = vmul.f32 0.03125, %v176_v8  ;;  %v246_v63 = vmul.f32 %v3722_v47, %v3722_v47  ;;  %v247_v40 = vmul.f32 %v3725_v37, %v3725_v37 }
 0x13c   :  { %v3734_v41 = vsub.f32 %v3563_v44, %v216_v24  ;;  %v3737_v3 = vsub.f32 %v3565_v45, %v217_v62  ;;  %v262_v4 = vsel %vm164_vm0, %v246_v63, 0.0  ;;  %v265_v10 = vsel %vm164_vm0, %v247_v40, 0.0  ;;  %v3777_v40 = vld [vmem:[#allocation8 + $0x10] sm:$0xff]  }
 0x13d   :  { %552 = vadd.xlane.f32.xlu1 %v551_v54  ;;  %263 = vadd.xlane.f32.xlu0 %v262_v4  ;;  %v460_v6 = vpop.xlane.xlu0 %459  ;;  %v463_v18 = vpop.xlane.xlu1 %462 }
 0x13e   :  { %v482_v20 = vmul.f32 0.03125, %v460_v6  ;;  %v483_v21 = vmul.f32 0.03125, %v463_v18  ;;  %v248_v44 = vmul.f32 %v3734_v41, %v3734_v41  ;;  %v249_v45 = vmul.f32 %v3737_v3, %v3737_v3  ;;  %2695 = vmatprep.subr.bf16.mxu1 %v3777_v40 }
 0x140   :  { %v3746_v22 = vsub.f32 %v3571_v48, %v482_v20  ;;  %v3749_v23 = vsub.f32 %v3573_v49, %v483_v21  ;;  %v268_v0 = vsel %vm164_vm0, %v248_v44, 0.0  ;;  %v271_v30 = vsel %vm164_vm0, %v249_v45, 0.0 }
 0x141   :  { %266 = vadd.xlane.f32.xlu1 %v265_v10  ;;  %269 = vadd.xlane.f32.xlu0 %v268_v0  ;;  %v466_v14 = vpop.xlane.xlu0 %465  ;;  %v469_v32 = vpop.xlane.xlu1 %468 }
 0x142   :  { %v484_v34 = vmul.f32 0.03125, %v466_v14  ;;  %v485_v35 = vmul.f32 0.03125, %v469_v32  ;;  %v514_v38 = vmul.f32 %v3746_v22, %v3746_v22  ;;  %v515_v48 = vmul.f32 %v3749_v23, %v3749_v23 }
 0x144   :  { %v3758_v49 = vsub.f32 %v3579_v52, %v484_v34  ;;  %v3761_v39 = vsub.f32 %v3581_v53, %v485_v35  ;;  %v554_v42 = vsel %vm164_vm0, %v514_v38, 0.0  ;;  %v557_v46 = vsel %vm164_vm0, %v515_v48, 0.0 }
 0x145   :  { %272 = vadd.xlane.f32.xlu1 %v271_v30  ;;  %555 = vadd.xlane.f32.xlu0 %v554_v42  ;;  %v179_v16 = vpop.xlane.xlu0 %178  ;;  %v182_v36 = vpop.xlane.xlu1 %181 }
 0x146   :  { %v218_v50 = vmul.f32 0.03125, %v179_v16  ;;  %v219_v51 = vmul.f32 0.03125, %v182_v36  ;;  %v516_v54 = vmul.f32 %v3758_v49, %v3758_v49  ;;  %v517_v52 = vmul.f32 %v3761_v39, %v3761_v39 }
 0x148   :  { %v3770_v8 = vsub.f32 %v3587_v56, %v218_v50  ;;  %v3773_v53 = vsub.f32 %v3589_v57, %v219_v51  ;;  %v560_v58 = vsel %vm164_vm0, %v516_v54, 0.0  ;;  %v563_v62 = vsel %vm164_vm0, %v517_v52, 0.0 }
 0x149   :  { %558 = vadd.xlane.f32.xlu1 %v557_v46  ;;  %561 = vadd.xlane.f32.xlu0 %v560_v58  ;;  %v185_v24 = vpop.xlane.xlu0 %184  ;;  %v188_v63 = vpop.xlane.xlu1 %187 }
 0x14a   :  { %v220_v4 = vmul.f32 0.03125, %v185_v24  ;;  %v221_v6 = vmul.f32 0.03125, %v188_v63  ;;  %v250_v10 = vmul.f32 %v3770_v8, %v3770_v8  ;;  %v251_v56 = vmul.f32 %v3773_v53, %v3773_v53 }
 0x14c   :  { %v3785_v57 = vsub.f32 %v3595_v60, %v220_v4  ;;  %v3788_v18 = vsub.f32 %v3597_v61, %v221_v6  ;;  %v274_v28 = vsel %vm164_vm0, %v250_v10, 0.0  ;;  %v277_v20 = vsel %vm164_vm0, %v251_v56, 0.0  ;;  %v3798_v61 = vld [vmem:[#allocation8 + $0x20] sm:$0xff]  }
 0x14d   :  { %564 = vadd.xlane.f32.xlu1 %v563_v62  ;;  %275 = vadd.xlane.f32.xlu0 %v274_v28 }
 0x14e   :  { %v252_v21 = vmul.f32 %v3785_v57, %v3785_v57  ;;  %v253_v44 = vmul.f32 %v3788_v18, %v3788_v18  ;;  %2715 = vmatprep.subr.bf16.mxu0 %v3798_v61 }
 0x150   :  { %v280_v45 = vsel %vm164_vm0, %v252_v21, 0.0  ;;  %v283_v60 = vsel %vm164_vm0, %v253_v44, 0.0  ;;  %v3802_v44 = vld [vmem:[#allocation7] ss:$0 sm:$0xff] }
 0x151   :  { %278 = vadd.xlane.f32.xlu1 %v277_v20  ;;  %281 = vadd.xlane.f32.xlu0 %v280_v45 }
 0x155   :  { %284 = vadd.xlane.f32.xlu1 %v283_v60 }
 0x1a2   :  { %v288_v0 = vpop.xlane.xlu0 %287 }
 0x1a3   :  { %v318_v14 = vmul.f32 0.03125, %v288_v0 }
 0x1a5   :  { %v334_v30 = vadd.f32 1e-05, %v318_v14 }
 0x1a6   :  { %v291_v32 = vpop.xlane.xlu1 %290  ;;  %v294_v34 = vpop.xlane.xlu0 %293 }
 0x1a7   :  { %2913 = vrsqrt.f32 %v334_v30  ;;  %v319_v35 = vmul.f32 0.03125, %v291_v32  ;;  %v320_v38 = vmul.f32 0.03125, %v294_v34 }
 0x1a9   :  { %v335_v48 = vadd.f32 1e-05, %v319_v35  ;;  %v336_v42 = vadd.f32 1e-05, %v320_v38 }
 0x1aa   :  { %v297_v16 = vpop.xlane.xlu1 %296  ;;  %v300_v46 = vpop.xlane.xlu0 %299 }
 0x1ab   :  { %2915 = vrsqrt.f32 %v335_v48  ;;  %v321_v36 = vmul.f32 0.03125, %v297_v16  ;;  %v322_v50 = vmul.f32 0.03125, %v300_v46 }
 0x1ac   :  { %2917 = vrsqrt.f32 %v336_v42  ;;  %v3807_v42 = vld [vmem:[#allocation7 + $0x1] ss:$0 sm:$0xff] }
 0x1ad   :  { %v337_v51 = vadd.f32 1e-05, %v321_v36  ;;  %v338_v54 = vadd.f32 1e-05, %v322_v50 }
 0x1ae   :  { %v303_v52 = vpop.xlane.xlu1 %302  ;;  %v306_v58 = vpop.xlane.xlu0 %305 }
 0x1af   :  { %2919 = vrsqrt.f32 %v337_v51  ;;  %v323_v24 = vmul.f32 0.03125, %v303_v52  ;;  %v324_v62 = vmul.f32 0.03125, %v306_v58 }
 0x1b0   :  { %2921 = vrsqrt.f32 %v338_v54 }
 0x1b1   :  { %v2914_v63 = vpop.eup %2913  ;;  %v339_v4 = vadd.f32 1e-05, %v323_v24  ;;  %v340_v6 = vadd.f32 1e-05, %v324_v62 }
 0x1b2   :  { %v309_v10 = vpop.xlane.xlu1 %308  ;;  %v520_v56 = vpop.xlane.xlu0 %519  ;;  %v366_v28 = vmul.f32 %v2914_v63, %v3604_v11 }
 0x1b3   :  { %2923 = vrsqrt.f32 %v339_v4  ;;  %v325_v20 = vmul.f32 0.03125, %v309_v10  ;;  %v566_v21 = vmul.f32 0.03125, %v520_v56 }
 0x1b4   :  { %2925 = vrsqrt.f32 %v340_v6  ;;  %v386_v35 = vmul.f32 %v3802_v44, %v366_v28 }
 0x1b5   :  { %v2916_v45 = vpop.eup %2915  ;;  %v341_v60 = vadd.f32 1e-05, %v325_v20  ;;  %v582_v0 = vadd.f32 1e-05, %v566_v21 }
 0x1b6   :  { %v2918_v14 = vpop.eup %2917  ;;  %v523_v30 = vpop.xlane.xlu1 %522  ;;  %v367_v34 = vmul.f32 %v2916_v45, %v3614_v26  ;;  %v406_v58 = vadd.f32 %v3807_v42, %v386_v35 }
 0x1b7   :  { %v526_v32 = vpop.xlane.xlu0 %525  ;;  %v368_v38 = vmul.f32 %v2918_v14, %v3607_v12  ;;  %2927 = vrsqrt.f32 %v341_v60  ;;  %v567_v11 = vmul.f32 0.03125, %v523_v30 }
 0x1b8   :  { %v568_v48 = vmul.f32 0.03125, %v526_v32  ;;  %2929 = vrsqrt.f32 %v582_v0  ;;  %v387_v16 = vmul.f32 %v3802_v44, %v367_v34 }
 0x1b9   :  { %v2920_v46 = vpop.eup %2919  ;;  %v583_v36 = vadd.f32 1e-05, %v567_v11  ;;  %v388_v24 = vmul.f32 %v3802_v44, %v368_v38 }
 0x1ba   :  { %v584_v50 = vadd.f32 1e-05, %v568_v48  ;;  %v2922_v51 = vpop.eup %2921  ;;  %v369_v54 = vmul.f32 %v2920_v46, %v3617_v27  ;;  %v529_v52 = vpop.xlane.xlu1 %528  ;;  %v407_v12 = vadd.f32 %v3807_v42, %v387_v16 }
 0x1bb   :  { %v532_v26 = vpop.xlane.xlu0 %531  ;;  %v370_v62 = vmul.f32 %v2922_v51, %v3626_v2  ;;  %2931 = vrsqrt.f32 %v583_v36  ;;  %v569_v63 = vmul.f32 0.03125, %v529_v52  ;;  %v408_v0 = vadd.f32 %v3807_v42, %v388_v24 }
 0x1bc   :  { %v570_v4 = vmul.f32 0.03125, %v532_v26  ;;  %2933 = vrsqrt.f32 %v584_v50  ;;  %v418_v6 = vpack.c.bf16 %v407_v12, %v406_v58  ;;  %v389_v10 = vmul.f32 %v3802_v44, %v369_v54  ;;  %v3829_v58 = vld [vmem:[#allocation7 + $0x2] ss:$0 sm:$0xff] }
 0x1bd   :  { %v2924_v56 = vpop.eup %2923  ;;  %v585_v28 = vadd.f32 1e-05, %v569_v63  ;;  %v390_v14 = vmul.f32 %v3802_v44, %v370_v62 }
 0x1be   :  { %v586_v27 = vadd.f32 1e-05, %v570_v4  ;;  %v2926_v20 = vpop.eup %2925  ;;  %v371_v21 = vmul.f32 %v2924_v56, %v3629_v5  ;;  %v535_v45 = vpop.xlane.xlu1 %534  ;;  %2687 = vmatprep.mubr.msk.bf16.mxu1 %vm164_vm0, %v418_v6  ;;  %v409_v2 = vadd.f32 %v3807_v42, %v389_v10  ;;  %v2898_v5 = vld [vmem:[#allocation8 + $0x18] sm:$0xff]  }
 0x1bf   :  { %v538_v60 = vpop.xlane.xlu0 %537  ;;  %v372_v30 = vmul.f32 %v2926_v20, %v3638_v55  ;;  %2935 = vrsqrt.f32 %v585_v28  ;;  %v571_v32 = vmul.f32 0.03125, %v535_v45  ;;  %v410_v55 = vadd.f32 %v3807_v42, %v390_v14 }
 0x1c0   :  { %v572_v34 = vmul.f32 0.03125, %v538_v60  ;;  %2937 = vrsqrt.f32 %v586_v27  ;;  %v419_v35 = vpack.c.bf16 %v409_v2, %v408_v0  ;;  %v391_v38 = vmul.f32 %v3802_v44, %v371_v21  ;;  %v3838_v21 = vld [vmem:[#allocation7 + $0x3] ss:$0 sm:$0xff] }
 0x1c1   :  { %v2928_v11 = vpop.eup %2927  ;;  %v587_v48 = vadd.f32 1e-05, %v571_v32  ;;  %v392_v52 = vmul.f32 %v3802_v44, %v372_v30 }
 0x1c2   :  { %v588_v16 = vadd.f32 1e-05, %v572_v34  ;;  %v2930_v46 = vpop.eup %2929  ;;  %v373_v36 = vmul.f32 %v2928_v11, %v3641_v9  ;;  %v541_v50 = vpop.xlane.xlu1 %540  ;;  %2688 = vmatmul.mubr.msk.bf16.vlgmr.msra.gmra.mrb[0].mxu1 %vm164_vm0, %v419_v35  ;;  %v411_v54 = vadd.f32 %v3807_v42, %v391_v38 }
 0x1c3   :  { %v544_v51 = vpop.xlane.xlu0 %543  ;;  %v614_v26 = vmul.f32 %v2930_v46, %v3650_v7  ;;  %2939 = vrsqrt.f32 %v587_v48  ;;  %v573_v12 = vmul.f32 0.03125, %v541_v50  ;;  %2696 = vmatpush3.bf16.msra.mxu1 %v3777_v40  ;;  %v412_v27 = vadd.f32 %v3807_v42, %v392_v52 }
 0x1c4   :  { %v574_v24 = vmul.f32 0.03125, %v544_v51  ;;  %2941 = vrsqrt.f32 %v588_v16  ;;  %v420_v9 = vpack.c.bf16 %v411_v54, %v410_v55  ;;  %v393_v62 = vmul.f32 %v3802_v44, %v373_v36  ;;  %2697 = vmatprep.subr.bf16.mxu1 %v2898_v5 }
 0x1c5   :  { %v2932_v63 = vpop.eup %2931  ;;  %v589_v4 = vadd.f32 1e-05, %v573_v12  ;;  %v634_v40 = vmul.f32 %v3829_v58, %v614_v26 }
 0x1c6   :  { %v590_v6 = vadd.f32 1e-05, %v574_v24  ;;  %v2934_v10 = vpop.eup %2933  ;;  %v615_v56 = vmul.f32 %v2932_v63, %v3653_v13  ;;  %v547_v28 = vpop.xlane.xlu1 %546  ;;  %2691 = vmatprep.mubr.msk.bf16.mxu1 %vm164_vm0, %v420_v9  ;;  %v413_v20 = vadd.f32 %v3807_v42, %v393_v62 }
 0x1c7   :  { %v550_v7 = vpop.xlane.xlu0 %549  ;;  %v616_v45 = vmul.f32 %v2934_v10, %v3662_v1  ;;  %2943 = vrsqrt.f32 %v589_v4  ;;  %v575_v60 = vmul.f32 0.03125, %v547_v28  ;;  %2698 = vmatpush3.bf16.msra.mxu1 %v2898_v5  ;;  %v654_v48 = vadd.f32 %v3838_v21, %v634_v40 }
 0x1c8   :  { %v576_v0 = vmul.f32 0.03125, %v550_v7  ;;  %2945 = vrsqrt.f32 %v590_v6  ;;  %v421_v13 = vpack.c.bf16 %v413_v20, %v412_v27  ;;  %v635_v2 = vmul.f32 %v3829_v58, %v615_v56 }
 0x1c9   :  { %v2936_v14 = vpop.eup %2935  ;;  %v636_v30 = vmul.f32 %v3829_v58, %v616_v45  ;;  %v591_v32 = vadd.f32 1e-05, %v575_v60 }
 0x1ca   :  { %v592_v34 = vadd.f32 1e-05, %v576_v0  ;;  %v2938_v35 = vpop.eup %2937  ;;  %v617_v38 = vmul.f32 %v2936_v14, %v3665_v15  ;;  %v553_v11 = vpop.xlane.xlu1 %552  ;;  %2692 = vmatmul.mubr.msk.bf16.gmra.mrb[4].mxu1 %vm164_vm0, %v421_v13  ;;  %v655_v5 = vadd.f32 %v3838_v21, %v635_v2 }
 0x1cb   :  { %v264_v1 = vpop.xlane.xlu0 %263  ;;  %v618_v16 = vmul.f32 %v2938_v35, %v3674_v43  ;;  %2947 = vrsqrt.f32 %v591_v32  ;;  %v577_v46 = vmul.f32 0.03125, %v553_v11  ;;  %v656_v15 = vadd.f32 %v3838_v21, %v636_v30 }
 0x1cc   :  { %v637_v36 = vmul.f32 %v3829_v58, %v617_v38  ;;  %2949 = vrsqrt.f32 %v592_v34  ;;  %v310_v50 = vmul.f32 0.03125, %v264_v1  ;;  %v3849_v51 = vpack.c.bf16 %v655_v5, %v654_v48 }
 0x1cd   :  { %v2940_v55 = vpop.eup %2939  ;;  %v593_v54 = vadd.f32 1e-05, %v577_v46  ;;  %v638_v62 = vmul.f32 %v3829_v58, %v618_v16 }
 0x1ce   :  { %v2942_v52 = vpop.eup %2941  ;;  %v657_v26 = vadd.f32 %v3838_v21, %v637_v36  ;;  %v619_v12 = vmul.f32 %v2940_v55, %v3677_v17  ;;  %v326_v24 = vadd.f32 1e-05, %v310_v50  ;;  %v267_v9 = vpop.xlane.xlu1 %266  ;;  %2699 = vmatprep.mubr.msk.bf16.mxu1 %vm164_vm0, %v3849_v51 }
 0x1cf   :  { %v270_v43 = vpop.xlane.xlu0 %269  ;;  %v620_v63 = vmul.f32 %v2942_v52, %v3686_v59  ;;  %2951 = vrsqrt.f32 %v593_v54  ;;  %v311_v4 = vmul.f32 0.03125, %v267_v9  ;;  %v658_v59 = vadd.f32 %v3838_v21, %v638_v62 }
 0x1d0   :  { %v312_v6 = vmul.f32 0.03125, %v270_v43  ;;  %2953 = vrsqrt.f32 %v326_v24  ;;  %v3858_v10 = vpack.c.bf16 %v657_v26, %v656_v15  ;;  %v639_v56 = vmul.f32 %v3829_v58, %v619_v12 }
 0x1d1   :  { %v2944_v28 = vpop.eup %2943  ;;  %v327_v17 = vadd.f32 1e-05, %v311_v4  ;;  %v640_v0 = vmul.f32 %v3829_v58, %v620_v63 }
 0x1d2   :  { %v328_v7 = vadd.f32 1e-05, %v312_v6  ;;  %v2946_v27 = vpop.eup %2945  ;;  %v621_v20 = vmul.f32 %v2944_v28, %v3689_v25  ;;  %v273_v40 = vpop.xlane.xlu1 %272  ;;  %2700 = vmatmul.mubr.msk.bf16.vlgmr.msra.gmra.mrb[8].mxu1 %vm164_vm0, %v3858_v10  ;;  %v659_v60 = vadd.f32 %v3838_v21, %v639_v56 }
 0x1d3   :  { %v556_v45 = vpop.xlane.xlu0 %555  ;;  %v622_v13 = vmul.f32 %v2946_v27, %v3698_v19  ;;  %2955 = vrsqrt.f32 %v327_v17  ;;  %v313_v2 = vmul.f32 0.03125, %v273_v40  ;;  %v660_v19 = vadd.f32 %v3838_v21, %v640_v0 }
 0x1d4   :  { %v578_v14 = vmul.f32 0.03125, %v556_v45  ;;  %2957 = vrsqrt.f32 %v328_v7  ;;  %v3868_v30 = vpack.c.bf16 %v659_v60, %v658_v59  ;;  %v641_v25 = vmul.f32 %v3829_v58, %v621_v20 }
 0x1d5   :  { %v2948_v32 = vpop.eup %2947  ;;  %v329_v34 = vadd.f32 1e-05, %v313_v2  ;;  %v642_v16 = vmul.f32 %v3829_v58, %v622_v13 }
 0x1d6   :  { %v594_v35 = vadd.f32 1e-05, %v578_v14  ;;  %v2950_v38 = vpop.eup %2949  ;;  %v623_v11 = vmul.f32 %v2948_v32, %v3701_v29  ;;  %v559_v1 = vpop.xlane.xlu1 %558  ;;  %2703 = vmatprep.mubr.msk.bf16.mxu1 %vm164_vm0, %v3868_v30  ;;  %v661_v5 = vadd.f32 %v3838_v21, %v641_v25 }
 0x1d7   :  { %v562_v48 = vpop.xlane.xlu0 %561  ;;  %v624_v46 = vmul.f32 %v2950_v38, %v3710_v31  ;;  %2959 = vrsqrt.f32 %v329_v34  ;;  %v579_v36 = vmul.f32 0.03125, %v559_v1  ;;  %v662_v31 = vadd.f32 %v3838_v21, %v642_v16 }
 0x1d8   :  { %v580_v50 = vmul.f32 0.03125, %v562_v48  ;;  %2961 = vrsqrt.f32 %v594_v35  ;;  %v3878_v55 = vpack.c.bf16 %v661_v5, %v660_v19  ;;  %v643_v29 = vmul.f32 %v3829_v58, %v623_v11 }
 0x1d9   :  { %v2952_v15 = vpop.eup %2951  ;;  %v595_v54 = vadd.f32 1e-05, %v579_v36  ;;  %v644_v62 = vmul.f32 %v3829_v58, %v624_v46 }
 0x1da   :  { %v596_v52 = vadd.f32 1e-05, %v580_v50  ;;  %v2954_v26 = vpop.eup %2953  ;;  %v625_v12 = vmul.f32 %v2952_v15, %v3713_v33  ;;  %v565_v24 = vpop.xlane.xlu1 %564  ;;  %2704 = vmatmul.mubr.msk.bf16.gmra.mrb[12].mxu1 %vm164_vm0, %v3878_v55  ;;  %v663_v43 = vadd.f32 %v3838_v21, %v643_v29 }
 0x1db   :  { %v276_v9 = vpop.xlane.xlu0 %275  ;;  %2963 = vrsqrt.f32 %v595_v54  ;;  %v581_v63 = vmul.f32 0.03125, %v565_v24  ;;  %v358_v33 = vmul.f32 %v2954_v26, %v3722_v47  ;;  %v664_v45 = vadd.f32 %v3838_v21, %v644_v62  ;;  %v2900_v24 = vld [vmem:[#allocation8 + $0x28] sm:$0xff]  }
 0x1dc   :  { %v314_v4 = vmul.f32 0.03125, %v276_v9  ;;  %2965 = vrsqrt.f32 %v596_v52  ;;  %v3887_v6 = vpack.c.bf16 %v663_v43, %v662_v31  ;;  %v645_v56 = vmul.f32 %v3829_v58, %v625_v12 }
 0x1dd   :  { %v2956_v28 = vpop.eup %2955  ;;  %v597_v17 = vadd.f32 1e-05, %v581_v63  ;;  %v378_v0 = vmul.f32 %v3802_v44, %v358_v33 }
 0x1de   :  { %v330_v7 = vadd.f32 1e-05, %v314_v4  ;;  %v2958_v27 = vpop.eup %2957  ;;  %v279_v20 = vpop.xlane.xlu1 %278  ;;  %2707 = vmatprep.mubr.msk.bf16.mxu1 %vm164_vm0, %v3887_v6  ;;  %v665_v59 = vadd.f32 %v3838_v21, %v645_v56  ;;  %v359_v60 = vmul.f32 %v2956_v28, %v3725_v37 }
 0x1df   :  { %v282_v40 = vpop.xlane.xlu0 %281  ;;  %v360_v13 = vmul.f32 %v2958_v27, %v3734_v41  ;;  %2967 = vrsqrt.f32 %v597_v17  ;;  %v315_v47 = vmul.f32 0.03125, %v279_v20  ;;  %v398_v37 = vadd.f32 %v3807_v42, %v378_v0 }
 0x1e0   :  { %v316_v2 = vmul.f32 0.03125, %v282_v40  ;;  %2969 = vrsqrt.f32 %v330_v7  ;;  %v3898_v14 = vpack.c.bf16 %v665_v59, %v664_v45  ;;  %v379_v25 = vmul.f32 %v3802_v44, %v359_v60 }
 0x1e1   :  { %v2960_v32 = vpop.eup %2959  ;;  %v331_v34 = vadd.f32 1e-05, %v315_v47  ;;  %v380_v48 = vmul.f32 %v3802_v44, %v360_v13 }
 0x1e2   :  { %v332_v35 = vadd.f32 1e-05, %v316_v2  ;;  %v2962_v38 = vpop.eup %2961  ;;  %v361_v11 = vmul.f32 %v2960_v32, %v3737_v3  ;;  %v285_v1 = vpop.xlane.xlu1 %284  ;;  %2708 = vmatmul.mubr.msk.bf16.gmra.mrb[16].mxu1 %vm164_vm0, %v3898_v14  ;;  %v399_v41 = vadd.f32 %v3807_v42, %v379_v25 }
 0x1e3   :  { %v626_v19 = vmul.f32 %v2962_v38, %v3746_v22  ;;  %2971 = vrsqrt.f32 %v331_v34  ;;  %v317_v5 = vmul.f32 0.03125, %v285_v1  ;;  %v400_v15 = vadd.f32 %v3807_v42, %v380_v48 }
 0x1e4   :  { %2973 = vrsqrt.f32 %v332_v35  ;;  %v414_v16 = vpack.c.bf16 %v399_v41, %v398_v37  ;;  %v381_v46 = vmul.f32 %v3802_v44, %v361_v11 }
 0x1e5   :  { %v2964_v36 = vpop.eup %2963  ;;  %v333_v3 = vadd.f32 1e-05, %v317_v5  ;;  %v646_v52 = vmul.f32 %v3829_v58, %v626_v19  ;;  %v3984_v5 = vld [vmem:[#allocation7 + $0x7] ss:$0 sm:$0xff] }
 0x1e6   :  { %v2966_v50 = vpop.eup %2965  ;;  %v627_v29 = vmul.f32 %v2964_v36, %v3749_v23  ;;  %2679 = vmatprep.mubr.msk.bf16.mxu0 %vm164_vm0, %v414_v16  ;;  %v401_v54 = vadd.f32 %v3807_v42, %v381_v46 }
 0x1e7   :  { %v628_v22 = vmul.f32 %v2966_v50, %v3758_v49  ;;  %2975 = vrsqrt.f32 %v333_v3  ;;  %v666_v23 = vadd.f32 %v3838_v21, %v646_v52 }
 0x1e8   :  { %v415_v26 = vpack.c.bf16 %v401_v54, %v400_v15  ;;  %v647_v12 = vmul.f32 %v3829_v58, %v627_v29 }
 0x1e9   :  { %v2968_v9 = vpop.eup %2967  ;;  %v648_v63 = vmul.f32 %v3829_v58, %v628_v22 }
 0x1ea   :  { %v2970_v31 = vpop.eup %2969  ;;  %v629_v43 = vmul.f32 %v2968_v9, %v3761_v39  ;;  %2680 = vmatmul.mubr.msk.bf16.vlgmr.msra.gmra.mrb[0].mxu0 %vm164_vm0, %v415_v26  ;;  %v667_v62 = vadd.f32 %v3838_v21, %v647_v12 }
 0x1eb   :  { %v362_v4 = vmul.f32 %v2970_v31, %v3770_v8  ;;  %2716 = vmatpush3.bf16.msra.mxu0 %v3798_v61  ;;  %v668_v17 = vadd.f32 %v3838_v21, %v648_v63 }
 0x1ec   :  { %v676_v49 = vpack.c.bf16 %v667_v62, %v666_v23  ;;  %v649_v56 = vmul.f32 %v3829_v58, %v629_v43  ;;  %2717 = vmatprep.subr.bf16.mxu0 %v2900_v24 }
 0x1ed   :  { %v2972_v33 = vpop.eup %2971  ;;  %v382_v27 = vmul.f32 %v3802_v44, %v362_v4 }
 0x1ee   :  { %v2974_v28 = vpop.eup %2973  ;;  %v363_v39 = vmul.f32 %v2972_v33, %v3773_v53  ;;  %2711 = vmatprep.mubr.msk.bf16.mxu1 %vm164_vm0, %v676_v49  ;;  %v669_v7 = vadd.f32 %v3838_v21, %v649_v56 }
 0x1ef   :  { %v364_v8 = vmul.f32 %v2974_v28, %v3785_v57  ;;  %2718 = vmatpush3.bf16.msra.mxu0 %v2900_v24  ;;  %v402_v53 = vadd.f32 %v3807_v42, %v382_v27 }
 0x1f0   :  { %v677_v61 = vpack.c.bf16 %v669_v7, %v668_v17  ;;  %v383_v20 = vmul.f32 %v3802_v44, %v363_v39 }
 0x1f1   :  { %v2976_v58 = vpop.eup %2975  ;;  %v384_v59 = vmul.f32 %v3802_v44, %v364_v8 }
 0x1f2   :  { %v365_v40 = vmul.f32 %v2976_v58, %v3788_v18  ;;  %2712 = vmatmul.mubr.msk.bf16.gmra.mrb[20].mxu1 %vm164_vm0, %v677_v61  ;;  %v403_v45 = vadd.f32 %v3807_v42, %v383_v20  ;;  %v3955_v18 = vld [vmem:[#allocation7 + $0x6] ss:$0 sm:$0xff] }
 0x1f3   :  { %v404_v57 = vadd.f32 %v3807_v42, %v384_v59 }
 0x1f4   :  { %v416_v21 = vpack.c.bf16 %v403_v45, %v402_v53  ;;  %v385_v60 = vmul.f32 %v3802_v44, %v365_v40 }
 0x1f6   :  { %2683 = vmatprep.mubr.msk.bf16.mxu0 %vm164_vm0, %v416_v21  ;;  %v405_v0 = vadd.f32 %v3807_v42, %v385_v60 }
 0x1f8   :  { %v417_v13 = vpack.c.bf16 %v405_v0, %v404_v57 }
 0x1fa   :  { %2684 = vmatmul.mubr.msk.bf16.gmra.mrb[4].mxu0 %vm164_vm0, %v417_v13 }
 0x1fb   :  { %2719 = vmatprep.mubr.msk.bf16.mxu0 %vm164_vm0, %v3849_v51 }
 0x202   :  { %2720 = vmatmul.mubr.msk.bf16.vlgmr.msra.gmra.mrb[8].mxu0 %vm164_vm0, %v3858_v10 }
 0x203   :  { %2723 = vmatprep.mubr.msk.bf16.mxu0 %vm164_vm0, %v3868_v30 }
 0x20a   :  { %2724 = vmatmul.mubr.msk.bf16.gmra.mrb[12].mxu0 %vm164_vm0, %v3878_v55 }
 0x20b   :  { %2727 = vmatprep.mubr.msk.bf16.mxu0 %vm164_vm0, %v3887_v6 }
 0x212   :  { %2728 = vmatmul.mubr.msk.bf16.gmra.mrb[16].mxu0 %vm164_vm0, %v3898_v14 }
 0x213   :  { %2731 = vmatprep.mubr.msk.bf16.mxu0 %vm164_vm0, %v676_v49 }
 0x21a   :  { %2732 = vmatmul.mubr.msk.bf16.gmra.mrb[20].mxu0 %vm164_vm0, %v677_v61 }
 0x295   :  { %v2689_v44 = vpop.f32.mrb[0].mxu1 }
 0x296   :  { %v3958_v42 = vadd.f32 %v2689_v44, %v3955_v18  ;;  %v803_v51 = vpop.f32.mrb[1].mxu1 }
 0x297   :  { %v2690_v10 = vpop.f32.mrb[2].mxu1  ;;  %v804_v6 = vadd.f32 %v3955_v18, %v803_v51 }
 0x298   :  { %v3961_v30 = vadd.f32 %v2690_v10, %v3955_v18  ;;  %v806_v55 = vpop.f32.mrb[3].mxu1 }
 0x299   :  { %v807_v47 = vadd.f32 %v3955_v18, %v806_v55 }
 0x29a   :  { %v1089_v2 = vpack.c.bf16 %v3961_v30, %v3958_v42 }
 0x29b   :  { %v1088_v14 = vpack.c.bf16 %v807_v47, %v804_v6 }
 0x29d   :  { %v2693_v25 = vpop.f32.mrb[4].mxu1  ;;  %2759 = vmatprep.mubr.msk.bf16.mxu0 %vm164_vm0, %v1088_v14 }
 0x29e   :  { %v3969_v32 = vadd.f32 %v2693_v25, %v3955_v18  ;;  %v819_v34 = vpop.f32.mrb[5].mxu1 }
 0x29f   :  { %v3972_v35 = vadd.f32 %v3955_v18, %v819_v34  ;;  %v2694_v38 = vpop.f32.mrb[6].mxu1 }
 0x2a0   :  { %v3975_v11 = vadd.f32 %v2694_v38, %v3955_v18  ;;  %v822_v1 = vpop.f32.mrb[7].mxu1 }
 0x2a1   :  { %v3978_v37 = vadd.f32 %v3955_v18, %v822_v1 }
 0x2a2   :  { %v1091_v41 = vpack.c.bf16 %v3975_v11, %v3969_v32 }
 0x2a3   :  { %v1090_v48 = vpack.c.bf16 %v3978_v37, %v3972_v35 }
 0x2a5   :  { %v2701_v19 = vpop.f32.mrb[8].mxu1 }
 0x2a6   :  { %v908_v16 = vpop.f32.mrb[9].mxu1  ;;  %v917_v36 = vadd.f32 %v2701_v19, %v3984_v5 }
 0x2a7   :  { %v2702_v46 = vpop.f32.mrb[10].mxu1  ;;  %v909_v29 = vadd.f32 %v3984_v5, %v908_v16 }
 0x2a8   :  { %v920_v3 = vadd.f32 %v2702_v46, %v3984_v5  ;;  %v911_v50 = vpop.f32.mrb[11].mxu1 }
 0x2a9   :  { %v912_v15 = vadd.f32 %v3984_v5, %v911_v50 }
 0x2aa   :  { %v1093_v54 = vpack.c.bf16 %v920_v3, %v917_v36 }
 0x2ab   :  { %v1092_v52 = vpack.c.bf16 %v912_v15, %v909_v29 }
 0x2ac   :  { %v1124_v56 = vsel %vm164_vm0, %v1093_v54, 0 }
 0x2ad   :  { %v2705_v22 = vpop.f32.mrb[12].mxu1  ;;  %2875 = vmatprep.subr.msk.bf16.mxu1 %vm164_vm0, %v1092_v52  ;;  %v1121_v26 = vsel %vm164_vm0, %v1092_v52, 0 }
 0x2ae   :  { %v924_v12 = vpop.f32.mrb[13].mxu1  ;;  %2736 = vmatpush3.bf16.xpose.msra.mxu1 %v1121_v26  ;;  %v933_v9 = vadd.f32 %v2705_v22, %v3984_v5 }
 0x2af   :  { %v2706_v24 = vpop.f32.mrb[14].mxu1  ;;  %2876 = vmatprep.subr.msk.bf16.mxu1 %vm164_vm0, %v1093_v54  ;;  %v925_v23 = vadd.f32 %v3984_v5, %v924_v12 }
 0x2b0   :  { %v936_v31 = vadd.f32 %v2706_v24, %v3984_v5  ;;  %v927_v43 = vpop.f32.mrb[15].mxu1 }
 0x2b1   :  { %v928_v62 = vadd.f32 %v3984_v5, %v927_v43 }
 0x2b2   :  { %v1095_v63 = vpack.c.bf16 %v936_v31, %v933_v9  ;;  %v2517_v9 = vld [vmem:[#allocation7 + $0x8] ss:$0 sm:$0xff] }
 0x2b3   :  { %v1094_v4 = vpack.c.bf16 %v928_v62, %v925_v23 }
 0x2b4   :  { %v1130_v55 = vsel %vm164_vm0, %v1095_v63, 0 }
 0x2b5   :  { %v2709_v49 = vpop.f32.mrb[16].mxu1  ;;  %v1127_v40 = vsel %vm164_vm0, %v1094_v4, 0 }
 0x2b6   :  { %v940_v33 = vpop.f32.mrb[17].mxu1  ;;  %2738 = vmatpush3.bf16.xpose.msra.mxu1 %v1124_v56  ;;  %v949_v39 = vadd.f32 %v2709_v49, %v3984_v5 }
 0x2b7   :  { %v2710_v28 = vpop.f32.mrb[18].mxu1  ;;  %2877 = vmatprep.subr.msk.bf16.mxu1 %vm164_vm0, %v1094_v4  ;;  %v941_v27 = vadd.f32 %v3984_v5, %v940_v33 }
 0x2b8   :  { %v952_v17 = vadd.f32 %v2710_v28, %v3984_v5  ;;  %v943_v7 = vpop.f32.mrb[19].mxu1 }
 0x2b9   :  { %v944_v8 = vadd.f32 %v3984_v5, %v943_v7 }
 0x2ba   :  { %v1097_v61 = vpack.c.bf16 %v952_v17, %v949_v39 }
 0x2bb   :  { %v1096_v20 = vpack.c.bf16 %v944_v8, %v941_v27 }
 0x2bc   :  { %v1213_v6 = vsel %vm164_vm0, %v1097_v61, 0 }
 0x2bd   :  { %v2681_v58 = vpop.f32.mrb[0].mxu0  ;;  %2879 = vmatprep.subr.msk.bf16.mxu0 %vm164_vm0, %v1096_v20  ;;  %v1210_v53 = vsel %vm164_vm0, %v1096_v20, 0 }
 0x2be   :  { %v771_v45 = vpop.f32.mrb[1].mxu0  ;;  %2740 = vmatpush3.bf16.xpose.msra.mxu1 %v1127_v40  ;;  %2752 = vmatpush3.bf16.xpose.msra.mxu0 %v1210_v53  ;;  %v780_v21 = vadd.f32 %v2681_v58, %v3955_v18 }
 0x2bf   :  { %v2682_v59 = vpop.f32.mrb[2].mxu0  ;;  %2878 = vmatprep.subr.msk.bf16.mxu1 %vm164_vm0, %v1095_v63  ;;  %2880 = vmatprep.subr.msk.bf16.mxu0 %vm164_vm0, %v1097_v61  ;;  %v772_v0 = vadd.f32 %v3955_v18, %v771_v45 }
 0x2c0   :  { %v783_v60 = vadd.f32 %v2682_v59, %v3955_v18  ;;  %v774_v57 = vpop.f32.mrb[3].mxu0 }
 0x2c1   :  { %v775_v13 = vadd.f32 %v3955_v18, %v774_v57 }
 0x2c2   :  { %v1085_v44 = vpack.c.bf16 %v783_v60, %v780_v21 }
 0x2c3   :  { %v1084_v51 = vpack.c.bf16 %v775_v13, %v772_v0 }
 0x2c5   :  { %v2713_v10 = vpop.f32.mrb[20].mxu1  ;;  %2743 = vmatprep.mubr.msk.bf16.mxu1 %vm164_vm0, %v1084_v51 }
 0x2c6   :  { %v956_v47 = vpop.f32.mrb[21].mxu1  ;;  %2742 = vmatpush3.bf16.xpose.msra.mxu1 %v1130_v55  ;;  %2754 = vmatpush3.bf16.xpose.msra.mxu0 %v1213_v6  ;;  %v965_v25 = vadd.f32 %v2713_v10, %v3984_v5 }
 0x2c7   :  { %v2714_v14 = vpop.f32.mrb[22].mxu1  ;;  %v957_v1 = vadd.f32 %v3984_v5, %v956_v47 }
 0x2c8   :  { %v968_v34 = vadd.f32 %v2714_v14, %v3984_v5  ;;  %v959_v38 = vpop.f32.mrb[23].mxu1 }
 0x2c9   :  { %v960_v19 = vadd.f32 %v3984_v5, %v959_v38 }
 0x2ca   :  { %v1099_v16 = vpack.c.bf16 %v968_v34, %v965_v25 }
 0x2cb   :  { %v1098_v46 = vpack.c.bf16 %v960_v19, %v957_v1 }
 0x2cc   :  { %v1219_v31 = vsel %vm164_vm0, %v1099_v16, 0 }
 0x2cd   :  { %v2685_v36 = vpop.f32.mrb[4].mxu0  ;;  %2744 = vmatmul.mubr.msk.bf16.vlgmr.msra.gmra.mrb[24].mxu1 %vm164_vm0, %v1085_v44  ;;  %2881 = vmatprep.subr.msk.bf16.mxu0 %vm164_vm0, %v1098_v46  ;;  %v1216_v3 = vsel %vm164_vm0, %v1098_v46, 0 }
 0x2ce   :  { %v787_v50 = vpop.f32.mrb[5].mxu0  ;;  %2756 = vmatpush3.bf16.xpose.msra.mxu0 %v1216_v3  ;;  %v796_v15 = vadd.f32 %v2685_v36, %v3955_v18 }
 0x2cf   :  { %v2686_v29 = vpop.f32.mrb[6].mxu0  ;;  %2882 = vmatprep.subr.msk.bf16.mxu0 %vm164_vm0, %v1099_v16  ;;  %v788_v5 = vadd.f32 %v3955_v18, %v787_v50 }
 0x2d0   :  { %v799_v54 = vadd.f32 %v2686_v29, %v3955_v18  ;;  %v790_v52 = vpop.f32.mrb[7].mxu0 }
 0x2d1   :  { %v791_v22 = vadd.f32 %v3955_v18, %v790_v52 }
 0x2d2   :  { %v1087_v26 = vpack.c.bf16 %v799_v54, %v796_v15 }
 0x2d3   :  { %v1086_v12 = vpack.c.bf16 %v791_v22, %v788_v5 }
 0x2d5   :  { %v2721_v24 = vpop.f32.mrb[8].mxu0  ;;  %2747 = vmatprep.mubr.msk.bf16.mxu1 %vm164_vm0, %v1086_v12 }
 0x2d6   :  { %v1021_v43 = vpop.f32.mrb[9].mxu0  ;;  %2748 = vmatmul.mubr.msk.bf16.gmra.mrb[28].mxu1 %vm164_vm0, %v1087_v26  ;;  %2758 = vmatpush3.bf16.xpose.msra.mxu0 %v1219_v31  ;;  %v1030_v62 = vadd.f32 %v2721_v24, %v2517_v9 }
 0x2d7   :  { %v2722_v23 = vpop.f32.mrb[10].mxu0  ;;  %v1022_v49 = vadd.f32 %v2517_v9, %v1021_v43 }
 0x2d8   :  { %v1033_v63 = vadd.f32 %v2722_v23, %v2517_v9  ;;  %v1024_v4 = vpop.f32.mrb[11].mxu0 }
 0x2d9   :  { %v1025_v56 = vadd.f32 %v2517_v9, %v1024_v4 }
 0x2da   :  { %v1101_v33 = vpack.c.bf16 %v1033_v63, %v1030_v62 }
 0x2db   :  { %v1100_v18 = vpack.c.bf16 %v1025_v56, %v1022_v49 }
 0x2dd   :  { %v2725_v28 = vpop.f32.mrb[12].mxu0  ;;  %2760 = vmatmul.mubr.msk.bf16.vlgmr.msra.gmra.mrb[24].mxu0 %vm164_vm0, %v1089_v2  ;;  %2767 = vmatprep.subr.bf16.mxu1 %v1100_v18 }
 0x2de   :  { %v1037_v39 = vpop.f32.mrb[13].mxu0  ;;  %2763 = vmatprep.mubr.msk.bf16.mxu0 %vm164_vm0, %v1090_v48  ;;  %2768 = vmatpush3.bf16.msra.mxu1 %v1100_v18  ;;  %v1046_v7 = vadd.f32 %v2725_v28, %v2517_v9 }
 0x2df   :  { %v2726_v17 = vpop.f32.mrb[14].mxu0  ;;  %2769 = vmatprep.subr.bf16.mxu1 %v1101_v33  ;;  %v1038_v61 = vadd.f32 %v2517_v9, %v1037_v39 }
 0x2e0   :  { %v1049_v27 = vadd.f32 %v2726_v17, %v2517_v9  ;;  %v1040_v8 = vpop.f32.mrb[15].mxu0 }
 0x2e1   :  { %v1041_v20 = vadd.f32 %v2517_v9, %v1040_v8 }
 0x2e2   :  { %v1103_v58 = vpack.c.bf16 %v1049_v27, %v1046_v7  ;;  %2770 = vmatpush3.bf16.msra.mxu1 %v1101_v33 }
 0x2e3   :  { %v1102_v42 = vpack.c.bf16 %v1041_v20, %v1038_v61 }
 0x2e5   :  { %v2729_v30 = vpop.f32.mrb[16].mxu0  ;;  %2764 = vmatmul.mubr.msk.bf16.gmra.mrb[28].mxu0 %vm164_vm0, %v1091_v41  ;;  %2771 = vmatprep.subr.bf16.mxu1 %v1102_v42 }
 0x2e6   :  { %v1062_v2 = vadd.f32 %v2729_v30, %v2517_v9  ;;  %v1053_v35 = vpop.f32.mrb[17].mxu0  ;;  %2772 = vmatpush3.bf16.msra.mxu1 %v1102_v42 }
 0x2e7   :  { %v2730_v37 = vpop.f32.mrb[18].mxu0  ;;  %2773 = vmatprep.subr.bf16.mxu1 %v1103_v58  ;;  %v1054_v53 = vadd.f32 %v2517_v9, %v1053_v35 }
 0x2e8   :  { %v1065_v48 = vadd.f32 %v2730_v37, %v2517_v9  ;;  %v1056_v40 = vpop.f32.mrb[19].mxu0 }
 0x2e9   :  { %v1057_v45 = vadd.f32 %v2517_v9, %v1056_v40 }
 0x2ea   :  { %v4042_v59 = vpack.c.bf16 %v1065_v48, %v1062_v2  ;;  %2774 = vmatpush3.bf16.msra.mxu1 %v1103_v58 }
 0x2eb   :  { %v4044_v21 = vpack.c.bf16 %v1057_v45, %v1054_v53 }
 0x2ed   :  { %v2733_v60 = vpop.f32.mrb[20].mxu0  ;;  %2783 = vmatprep.subr.bf16.mxu1 %v4044_v21 }
 0x2ee   :  { %v1078_v32 = vadd.f32 %v2733_v60, %v2517_v9  ;;  %v1069_v11 = vpop.f32.mrb[21].mxu0 }
 0x2ef   :  { %v1070_v41 = vadd.f32 %v2517_v9, %v1069_v11  ;;  %v2734_v57 = vpop.f32.mrb[22].mxu0 }
 0x2f0   :  { %v1081_v0 = vadd.f32 %v2734_v57, %v2517_v9  ;;  %v1072_v13 = vpop.f32.mrb[23].mxu0 }
 0x2f1   :  { %v1073_v44 = vadd.f32 %v2517_v9, %v1072_v13 }
 0x2f2   :  { %v4047_v51 = vpack.c.bf16 %v1081_v0, %v1078_v32 }
 0x2f3   :  { %v4049_v10 = vpack.c.bf16 %v1073_v44, %v1070_v41 }
 0x3a0   :  { %v2745_v55 = vpop.f32.mrb[24].mxu1 }
 0x3a1   :  { %v1166_v6 = vpop.f32.mrb[25].mxu1  ;;  %v1293_v38 = vsel %vm1286_vm1, %v2745_v55, -inf }
 0x3a2   :  { %v2746_v47 = vpop.f32.mrb[26].mxu1  ;;  %v1287_v14 = vsel %vm1286_vm1, %v1166_v6, -inf }
 0x3a3   :  { %1288 = vmax.xlane.f32.xlu0 %v1287_v14  ;;  %v1169_v25 = vpop.f32.mrb[27].mxu1  ;;  %v1296_v1 = vsel %vm1286_vm1, %v2746_v47, -inf }
 0x3a4   :  { %v1290_v34 = vsel %vm1286_vm1, %v1169_v25, -inf }
 0x3a5   :  { %1291 = vmax.xlane.f32.xlu1 %v1290_v34 }
 0x3a7   :  { %1294 = vmax.xlane.f32.xlu0 %v1293_v38 }
 0x3a9   :  { %1297 = vmax.xlane.f32.xlu1 %v1296_v1  ;;  %v4055_v19 = vpop.f32.mrb[28].mxu1 }
 0x3aa   :  { %v1182_v16 = vpop.f32.mrb[29].mxu1  ;;  %v1305_v29 = vsel %vm1286_vm1, %v4055_v19, -inf }
 0x3ab   :  { %v4057_v46 = vpop.f32.mrb[30].mxu1  ;;  %v1299_v36 = vsel %vm1286_vm1, %v1182_v16, -inf }
 0x3ac   :  { %1300 = vmax.xlane.f32.xlu0 %v1299_v36  ;;  %v1185_v3 = vpop.f32.mrb[31].mxu1  ;;  %v1308_v52 = vsel %vm1286_vm1, %v4057_v46, -inf }
 0x3ad   :  { %v1302_v50 = vsel %vm1286_vm1, %v1185_v3, -inf }
 0x3ae   :  { %1303 = vmax.xlane.f32.xlu1 %v1302_v50 }
 0x3b0   :  { %v4063_v15 = vpop.f32.mrb[24].mxu0  ;;  %1306 = vmax.xlane.f32.xlu0 %v1305_v29 }
 0x3b1   :  { %v4065_v54 = vpop.f32.mrb[25].mxu0  ;;  %v1317_v24 = vsel %vm1286_vm1, %v4063_v15, -inf }
 0x3b2   :  { %v4069_v5 = vpop.f32.mrb[26].mxu0  ;;  %1309 = vmax.xlane.f32.xlu1 %v1308_v52  ;;  %v1311_v22 = vsel %vm1286_vm1, %v4065_v54, -inf }
 0x3b3   :  { %v4073_v26 = vpop.f32.mrb[27].mxu0  ;;  %v1320_v43 = vsel %vm1286_vm1, %v4069_v5, -inf }
 0x3b4   :  { %1312 = vmax.xlane.f32.xlu0 %v1311_v22  ;;  %v1314_v12 = vsel %vm1286_vm1, %v4073_v26, -inf }
 0x3b6   :  { %1315 = vmax.xlane.f32.xlu1 %v1314_v12 }
 0x3b8   :  { %v4079_v9 = vpop.f32.mrb[28].mxu0  ;;  %1318 = vmax.xlane.f32.xlu0 %v1317_v24 }
 0x3b9   :  { %v4081_v31 = vpop.f32.mrb[29].mxu0  ;;  %v1329_v49 = vsel %vm1286_vm1, %v4079_v9, -inf }
 0x3ba   :  { %v4085_v23 = vpop.f32.mrb[30].mxu0  ;;  %1321 = vmax.xlane.f32.xlu1 %v1320_v43  ;;  %v1323_v62 = vsel %vm1286_vm1, %v4081_v31, -inf }
 0x3bb   :  { %v4089_v63 = vpop.f32.mrb[31].mxu0  ;;  %v1332_v56 = vsel %vm1286_vm1, %v4085_v23, -inf }
 0x3bc   :  { %1324 = vmax.xlane.f32.xlu0 %v1323_v62  ;;  %v1326_v4 = vsel %vm1286_vm1, %v4089_v63, -inf }
 0x3be   :  { %1327 = vmax.xlane.f32.xlu1 %v1326_v4 }
 0x3c0   :  { %1330 = vmax.xlane.f32.xlu0 %v1329_v49 }
 0x3c2   :  { %1333 = vmax.xlane.f32.xlu1 %v1332_v56 }
 0x430   :  { %v1289_v33 = vpop.xlane.xlu0 %1288 }
 0x431   :  { %v1335_v18 = vsub.f32 %v1166_v6, %v1289_v33 }
 0x432   :  { %v1292_v28 = vpop.xlane.xlu1 %1291 }
 0x433   :  { %v1351_v39 = vmul.f32 1.442695, %v1335_v18  ;;  %v1336_v17 = vsub.f32 %v1169_v25, %v1292_v28 }
 0x434   :  { %v1295_v7 = vpop.xlane.xlu0 %1294 }
 0x435   :  { %2977 = vpow2.f32 %v1351_v39  ;;  %v1353_v27 = vmul.f32 1.442695, %v1336_v17  ;;  %v1337_v8 = vsub.f32 %v2745_v55, %v1295_v7 }
 0x436   :  { %v1298_v61 = vpop.xlane.xlu1 %1297 }
 0x437   :  { %2979 = vpow2.f32 %v1353_v27  ;;  %v1355_v20 = vmul.f32 1.442695, %v1337_v8  ;;  %v1338_v58 = vsub.f32 %v2746_v47, %v1298_v61 }
 0x439   :  { %2981 = vpow2.f32 %v1355_v20  ;;  %v1357_v42 = vmul.f32 1.442695, %v1338_v58  ;;  %v1301_v30 = vpop.xlane.xlu0 %1300 }
 0x43a   :  { %v1339_v2 = vsub.f32 %v1182_v16, %v1301_v30 }
 0x43b   :  { %2983 = vpow2.f32 %v1357_v42  ;;  %v1304_v35 = vpop.xlane.xlu1 %1303 }
 0x43c   :  { %v1359_v37 = vmul.f32 1.442695, %v1339_v2  ;;  %v1340_v48 = vsub.f32 %v1185_v3, %v1304_v35 }
 0x43d   :  { %v1307_v40 = vpop.xlane.xlu0 %1306 }
 0x43e   :  { %2985 = vpow2.f32 %v1359_v37  ;;  %v1361_v53 = vmul.f32 1.442695, %v1340_v48  ;;  %v1341_v45 = vsub.f32 %v4055_v19, %v1307_v40 }
 0x43f   :  { %v4098_v60 = vpop.eup %2977  ;;  %v1310_v32 = vpop.xlane.xlu1 %1309 }
 0x440   :  { %2987 = vpow2.f32 %v1361_v53  ;;  %v1363_v11 = vmul.f32 1.442695, %v1341_v45  ;;  %v1342_v41 = vsub.f32 %v4057_v46, %v1310_v32  ;;  %v1383_v57 = vsel %vm1286_vm1, %v4098_v60, 0.0  ;;  %v2901_v32 = vld [vmem:[#allocation8 + $0x30] sm:$0xff]  }
 0x441   :  { %v4103_v0 = vpop.eup %2979  ;;  %1384 = vadd.xlane.f32.xlu0 %v1383_v57  ;;  %v1313_v13 = vpop.xlane.xlu0 %1312  ;;  %2799 = vmatprep.subr.bf16.mxu0 %v2901_v32 }
 0x442   :  { %2989 = vpow2.f32 %v1363_v11  ;;  %v1365_v44 = vmul.f32 1.442695, %v1342_v41  ;;  %v1343_v55 = vsub.f32 %v4065_v54, %v1313_v13  ;;  %v1386_v6 = vsel %vm1286_vm1, %v4103_v0, 0.0  ;;  %v2902_v11 = vld [vmem:[#allocation8 + $0x38] sm:$0xff]   ;;  %2800 = vmatpush3.bf16.msra.mxu0 %v2901_v32 }
 0x443   :  { %v4108_v47 = vpop.eup %2981  ;;  %1387 = vadd.xlane.f32.xlu1 %v1386_v6  ;;  %v1316_v14 = vpop.xlane.xlu1 %1315  ;;  %2801 = vmatprep.subr.bf16.mxu0 %v2902_v11 }
 0x444   :  { %2991 = vpow2.f32 %v1365_v44  ;;  %v1367_v25 = vmul.f32 1.442695, %v1343_v55  ;;  %v1344_v34 = vsub.f32 %v4073_v26, %v1316_v14  ;;  %v1389_v38 = vsel %vm1286_vm1, %v4108_v47, 0.0 }
 0x445   :  { %v4113_v1 = vpop.eup %2983  ;;  %1390 = vadd.xlane.f32.xlu0 %v1389_v38  ;;  %v1319_v19 = vpop.xlane.xlu0 %1318 }
 0x446   :  { %2993 = vpow2.f32 %v1367_v25  ;;  %v1369_v16 = vmul.f32 1.442695, %v1344_v34  ;;  %v1345_v46 = vsub.f32 %v4063_v15, %v1319_v19  ;;  %v1392_v36 = vsel %vm1286_vm1, %v4113_v1, 0.0  ;;  %2802 = vmatpush3.bf16.msra.mxu0 %v2902_v11 }
 0x447   :  { %1393 = vadd.xlane.f32.xlu1 %v1392_v36  ;;  %v1322_v3 = vpop.xlane.xlu1 %1321 }
 0x448   :  { %v4118_v50 = vpop.eup %2985  ;;  %2995 = vpow2.f32 %v1369_v16  ;;  %v1371_v29 = vmul.f32 1.442695, %v1345_v46  ;;  %v1346_v54 = vsub.f32 %v4069_v5, %v1322_v3 }
 0x449   :  { %v1325_v52 = vpop.xlane.xlu0 %1324  ;;  %v1395_v22 = vsel %vm1286_vm1, %v4118_v50, 0.0 }
 0x44a   :  { %v4123_v26 = vpop.eup %2987  ;;  %2997 = vpow2.f32 %v1371_v29  ;;  %v1373_v12 = vmul.f32 1.442695, %v1346_v54  ;;  %v1347_v15 = vsub.f32 %v4081_v31, %v1325_v52  ;;  %1396 = vadd.xlane.f32.xlu0 %v1395_v22 }
 0x44b   :  { %v1328_v24 = vpop.xlane.xlu1 %1327  ;;  %v1398_v43 = vsel %vm1286_vm1, %v4123_v26, 0.0 }
 0x44c   :  { %v4128_v62 = vpop.eup %2989  ;;  %2999 = vpow2.f32 %v1373_v12  ;;  %v1375_v4 = vmul.f32 1.442695, %v1347_v15  ;;  %v1348_v5 = vsub.f32 %v4089_v63, %v1328_v24  ;;  %1399 = vadd.xlane.f32.xlu1 %v1398_v43 }
 0x44d   :  { %v1331_v49 = vpop.xlane.xlu0 %1330  ;;  %v1401_v56 = vsel %vm1286_vm1, %v4128_v62, 0.0 }
 0x44e   :  { %v4133_v33 = vpop.eup %2991  ;;  %3001 = vpow2.f32 %v1375_v4  ;;  %v1377_v31 = vmul.f32 1.442695, %v1348_v5  ;;  %v1349_v18 = vsub.f32 %v4079_v9, %v1331_v49  ;;  %1402 = vadd.xlane.f32.xlu0 %v1401_v56 }
 0x44f   :  { %v1334_v28 = vpop.xlane.xlu1 %1333  ;;  %v1404_v39 = vsel %vm1286_vm1, %v4133_v33, 0.0 }
 0x450   :  { %v4138_v17 = vpop.eup %2993  ;;  %3003 = vpow2.f32 %v1377_v31  ;;  %v1379_v63 = vmul.f32 1.442695, %v1349_v18  ;;  %v1350_v7 = vsub.f32 %v4085_v23, %v1334_v28  ;;  %1405 = vadd.xlane.f32.xlu1 %v1404_v39 }
 0x451   :  { %v1407_v27 = vsel %vm1286_vm1, %v4138_v17, 0.0 }
 0x452   :  { %v4143_v8 = vpop.eup %2995  ;;  %3005 = vpow2.f32 %v1379_v63  ;;  %v1381_v61 = vmul.f32 1.442695, %v1350_v7  ;;  %1408 = vadd.xlane.f32.xlu0 %v1407_v27 }
 0x453   :  { %v1410_v9 = vsel %vm1286_vm1, %v4143_v8, 0.0 }
 0x454   :  { %v4147_v20 = vpop.eup %2997  ;;  %3007 = vpow2.f32 %v1381_v61  ;;  %1411 = vadd.xlane.f32.xlu1 %v1410_v9 }
 0x455   :  { %v1413_v58 = vsel %vm1286_vm1, %v4147_v20, 0.0 }
 0x456   :  { %v4151_v23 = vpop.eup %2999  ;;  %1414 = vadd.xlane.f32.xlu0 %v1413_v58 }
 0x457   :  { %v1416_v42 = vsel %vm1286_vm1, %v4151_v23, 0.0 }
 0x458   :  { %v4155_v30 = vpop.eup %3001  ;;  %1417 = vadd.xlane.f32.xlu1 %v1416_v42 }
 0x459   :  { %v1419_v2 = vsel %vm1286_vm1, %v4155_v30, 0.0 }
 0x45a   :  { %v4159_v35 = vpop.eup %3003  ;;  %1420 = vadd.xlane.f32.xlu0 %v1419_v2 }
 0x45b   :  { %v1422_v37 = vsel %vm1286_vm1, %v4159_v35, 0.0 }
 0x45c   :  { %v4163_v48 = vpop.eup %3005  ;;  %1423 = vadd.xlane.f32.xlu1 %v1422_v37 }
 0x45d   :  { %v1425_v40 = vsel %vm1286_vm1, %v4163_v48, 0.0 }
 0x45e   :  { %v4167_v53 = vpop.eup %3007  ;;  %1426 = vadd.xlane.f32.xlu0 %v1425_v40 }
 0x45f   :  { %v1428_v45 = vsel %vm1286_vm1, %v4167_v53, 0.0 }
 0x460   :  { %1429 = vadd.xlane.f32.xlu1 %v1428_v45 }
 0x4ce   :  { %v1385_v41 = vpop.xlane.xlu0 %1384 }
 0x4cf   :  { %3009 = vrcp.f32 %v1385_v41 }
 0x4d0   :  { %v1388_v57 = vpop.xlane.xlu1 %1387 }
 0x4d1   :  { %3011 = vrcp.f32 %v1388_v57 }
 0x4d2   :  { %v1391_v13 = vpop.xlane.xlu0 %1390 }
 0x4d3   :  { %3013 = vrcp.f32 %v1391_v13 }
 0x4d4   :  { %v1394_v44 = vpop.xlane.xlu1 %1393 }
 0x4d5   :  { %3015 = vrcp.f32 %v1394_v44 }
 0x4d7   :  { %v1397_v55 = vpop.xlane.xlu0 %1396 }
 0x4d8   :  { %3017 = vrcp.f32 %v1397_v55 }
 0x4d9   :  { %v3010_v6 = vpop.eup %3009  ;;  %v1400_v14 = vpop.xlane.xlu1 %1399 }
 0x4da   :  { %3019 = vrcp.f32 %v1400_v14  ;;  %v1447_v38 = vmul.f32 %v3010_v6, %v4098_v60 }
 0x4db   :  { %v3012_v25 = vpop.eup %3011  ;;  %v1403_v34 = vpop.xlane.xlu0 %1402 }
 0x4dc   :  { %3021 = vrcp.f32 %v1403_v34  ;;  %v1448_v19 = vmul.f32 %v3012_v25, %v4103_v0 }
 0x4dd   :  { %v3014_v16 = vpop.eup %3013  ;;  %v1406_v46 = vpop.xlane.xlu1 %1405 }
 0x4de   :  { %3023 = vrcp.f32 %v1406_v46  ;;  %v1463_v36 = vpack.c.bf16 %v1448_v19, %v1447_v38  ;;  %v1449_v54 = vmul.f32 %v3014_v16, %v4108_v47 }
 0x4df   :  { %v3016_v3 = vpop.eup %3015  ;;  %v1409_v29 = vpop.xlane.xlu0 %1408 }
 0x4e0   :  { %v1450_v52 = vmul.f32 %v3016_v3, %v4113_v1  ;;  %3025 = vrcp.f32 %v1409_v29  ;;  %2775 = vmatprep.mubr.msk.bf16.mxu1 %vm1286_vm1, %v1463_v36 }
 0x4e1   :  { %v1412_v22 = vpop.xlane.xlu1 %1411 }
 0x4e2   :  { %v3018_v12 = vpop.eup %3017  ;;  %v1464_v15 = vpack.c.bf16 %v1450_v52, %v1449_v54  ;;  %3027 = vrcp.f32 %v1412_v22  ;;  %v4210_v54 = vld [vmem:[#allocation7 + $0x9] ss:$0 sm:$0xff] }
 0x4e3   :  { %v1415_v60 = vpop.xlane.xlu0 %1414  ;;  %v1451_v43 = vmul.f32 %v3018_v12, %v4118_v50 }
 0x4e4   :  { %v3020_v24 = vpop.eup %3019  ;;  %3029 = vrcp.f32 %v1415_v60  ;;  %2776 = vmatmul.mubr.msk.bf16.vlgmr.msra.gmra.mrb[32].mxu1 %vm1286_vm1, %v1464_v15 }
 0x4e5   :  { %2784 = vmatpush3.bf16.msra.mxu1 %v4044_v21  ;;  %v1418_v0 = vpop.xlane.xlu1 %1417  ;;  %v1452_v47 = vmul.f32 %v3020_v24, %v4123_v26 }
 0x4e6   :  { %v3022_v1 = vpop.eup %3021  ;;  %3031 = vrcp.f32 %v1418_v0  ;;  %2785 = vmatprep.subr.bf16.mxu1 %v4042_v59  ;;  %v3105_v0 = vld [vmem:[#allocation2] sm:$0xff] }
 0x4e7   :  { %v1421_v4 = vpop.xlane.xlu0 %1420  ;;  %v1465_v5 = vpack.c.bf16 %v1452_v47, %v1451_v43  ;;  %v1453_v21 = vmul.f32 %v3022_v1, %v4128_v62 }
 0x4e8   :  { %v3024_v49 = vpop.eup %3023  ;;  %3033 = vrcp.f32 %v1421_v4  ;;  %v3106_v4 = vld [vmem:[#allocation2 + $0x10] sm:$0xff] }
 0x4e9   :  { %2786 = vmatpush3.bf16.msra.mxu1 %v4042_v59  ;;  %v1424_v56 = vpop.xlane.xlu1 %1423  ;;  %2779 = vmatprep.mubr.msk.bf16.mxu1 %vm1286_vm1, %v1465_v5  ;;  %v1454_v31 = vmul.f32 %v3024_v49, %v4133_v33  ;;  %v3107_v49 = vld [vmem:[#allocation2 + $0x8] sm:$0xff] }
 0x4ea   :  { %v3026_v50 = vpop.eup %3025  ;;  %3035 = vrcp.f32 %v1424_v56  ;;  %2787 = vmatprep.subr.bf16.mxu1 %v4049_v10 }
 0x4eb   :  { %v1427_v26 = vpop.xlane.xlu0 %1426  ;;  %v1466_v18 = vpack.c.bf16 %v1454_v31, %v1453_v21  ;;  %v1455_v59 = vmul.f32 %v3026_v50, %v4138_v17  ;;  %v3108_v31 = vld [vmem:[#allocation2 + $0x18] sm:$0xff] }
 0x4ec   :  { %v3028_v28 = vpop.eup %3027  ;;  %3037 = vrcp.f32 %v1427_v26 }
 0x4ed   :  { %2788 = vmatpush3.bf16.msra.mxu1 %v4049_v10  ;;  %v1430_v39 = vpop.xlane.xlu1 %1429  ;;  %v1456_v63 = vmul.f32 %v3028_v28, %v4143_v8 }
 0x4ee   :  { %v3030_v7 = vpop.eup %3029  ;;  %3039 = vrcp.f32 %v1430_v39  ;;  %2780 = vmatmul.mubr.msk.bf16.gmra.mrb[36].mxu1 %vm1286_vm1, %v1466_v18  ;;  %2789 = vmatprep.subr.bf16.mxu1 %v4047_v51 }
 0x4ef   :  { %v1467_v62 = vpack.c.bf16 %v1456_v63, %v1455_v59  ;;  %v1457_v27 = vmul.f32 %v3030_v7, %v4147_v20 }
 0x4f0   :  { %v3032_v33 = vpop.eup %3031 }
 0x4f1   :  { %v1458_v61 = vmul.f32 %v3032_v33, %v4151_v23  ;;  %2790 = vmatpush3.bf16.msra.mxu1 %v4047_v51  ;;  %2791 = vmatprep.mubr.msk.bf16.mxu1 %vm1286_vm1, %v1467_v62 }
 0x4f2   :  { %v3034_v10 = vpop.eup %3033 }
 0x4f3   :  { %v1468_v17 = vpack.c.bf16 %v1458_v61, %v1457_v27  ;;  %v1459_v8 = vmul.f32 %v3034_v10, %v4155_v30  ;;  %v3109_v27 = vld [vmem:[#allocation2 + $0x20] sm:$0xff] }
 0x4f4   :  { %v3036_v9 = vpop.eup %3035 }
 0x4f5   :  { %v1460_v58 = vmul.f32 %v3036_v9, %v4159_v35  ;;  %v3110_v9 = vld [vmem:[#allocation2 + $0x30] sm:$0xff] }
 0x4f6   :  { %v3038_v42 = vpop.eup %3037  ;;  %2792 = vmatmul.mubr.msk.bf16.vlgmr.msra.gmra.mrb[40].mxu1 %vm1286_vm1, %v1468_v17 }
 0x4f7   :  { %v1469_v2 = vpack.c.bf16 %v1460_v58, %v1459_v8  ;;  %v1461_v20 = vmul.f32 %v3038_v42, %v4163_v48  ;;  %v3111_v58 = vld [vmem:[#allocation2 + $0x28] sm:$0xff] }
 0x4f8   :  { %v3040_v37 = vpop.eup %3039 }
 0x4f9   :  { %2795 = vmatprep.mubr.msk.bf16.mxu1 %vm1286_vm1, %v1469_v2  ;;  %v1462_v51 = vmul.f32 %v3040_v37, %v4167_v53  ;;  %v3112_v37 = vld [vmem:[#allocation2 + $0x38] sm:$0xff] }
 0x4fb   :  { %v1470_v23 = vpack.c.bf16 %v1462_v51, %v1461_v20 }
 0x4fe   :  { %2796 = vmatmul.mubr.msk.bf16.gmra.mrb[44].mxu1 %vm1286_vm1, %v1470_v23 }
 0x5b7   :  { %v2777_v40 = vpop.f32.mrb[32].mxu1 }
 0x5b8   :  { %v1517_v45 = vpop.f32.mrb[33].mxu1 }
 0x5b9   :  { %v2778_v32 = vpop.f32.mrb[34].mxu1 }
 0x5ba   :  { %v1626_v30 = vpack.c.bf16 %v2778_v32, %v2777_v40  ;;  %v1520_v11 = vpop.f32.mrb[35].mxu1 }
 0x5bb   :  { %v1625_v35 = vpack.c.bf16 %v1520_v11, %v1517_v45 }
 0x5bd   :  { %2803 = vmatprep.mubr.msk.bf16.mxu0 %vm164_vm0, %v1625_v35 }
 0x5be   :  { %2804 = vmatmul.mubr.msk.bf16.vlgmr.msra.gmra.mrb[32].mxu0 %vm164_vm0, %v1626_v30 }
 0x5c1   :  { %v2781_v41 = vpop.f32.mrb[36].mxu1 }
 0x5c2   :  { %v1533_v57 = vpop.f32.mrb[37].mxu1 }
 0x5c3   :  { %v2782_v13 = vpop.f32.mrb[38].mxu1 }
 0x5c4   :  { %v1628_v44 = vpack.c.bf16 %v2782_v13, %v2781_v41  ;;  %v1536_v48 = vpop.f32.mrb[39].mxu1  ;;  %v3113_v41 = vld [vmem:[#allocation2 + $0x40] sm:$0xff] }
 0x5c5   :  { %v1627_v55 = vpack.c.bf16 %v1536_v48, %v1533_v57 }
 0x5c7   :  { %2807 = vmatprep.mubr.msk.bf16.mxu0 %vm164_vm0, %v1627_v55  ;;  %v3114_v55 = vld [vmem:[#allocation2 + $0x50] sm:$0xff] }
 0x5c8   :  { %2808 = vmatmul.mubr.msk.bf16.gmra.mrb[36].mxu0 %vm164_vm0, %v1628_v44 }
 0x5c9   :  { %v2793_v53 = vpop.f32.mrb[40].mxu1 }
 0x5ca   :  { %v1594_v6 = vpop.f32.mrb[41].mxu1 }
 0x5cb   :  { %v2794_v14 = vpop.f32.mrb[42].mxu1 }
 0x5cc   :  { %v1630_v25 = vpack.c.bf16 %v2794_v14, %v2793_v53  ;;  %v1597_v34 = vpop.f32.mrb[43].mxu1 }
 0x5cd   :  { %v1629_v38 = vpack.c.bf16 %v1597_v34, %v1594_v6  ;;  %v3115_v6 = vld [vmem:[#allocation2 + $0x48] sm:$0xff]  ;;  %v3116_v34 = vld [vmem:[#allocation2 + $0x58] sm:$0xff] }
 0x5cf   :  { %2811 = vmatprep.mubr.msk.bf16.mxu0 %vm164_vm0, %v1629_v38 }
 0x5d0   :  { %2812 = vmatmul.mubr.msk.bf16.gmra.mrb[40].mxu0 %vm164_vm0, %v1630_v25 }
 0x5d1   :  { %v2797_v19 = vpop.f32.mrb[44].mxu1 }
 0x5d2   :  { %v1610_v16 = vpop.f32.mrb[45].mxu1 }
 0x5d3   :  { %v2798_v46 = vpop.f32.mrb[46].mxu1 }
 0x5d4   :  { %v1632_v36 = vpack.c.bf16 %v2798_v46, %v2797_v19  ;;  %v1613_v3 = vpop.f32.mrb[47].mxu1 }
 0x5d5   :  { %v1631_v29 = vpack.c.bf16 %v1613_v3, %v1610_v16 }
 0x5d7   :  { %2815 = vmatprep.mubr.msk.bf16.mxu0 %vm164_vm0, %v1631_v29 }
 0x5d8   :  { %2816 = vmatmul.mubr.msk.bf16.gmra.mrb[44].mxu0 %vm164_vm0, %v1632_v36 }
 0x691   :  { %v2805_v52 = vpop.f32.mrb[32].mxu0 }
 0x692   :  { %v1707_v22 = vpop.f32.mrb[33].mxu0  ;;  %v1716_v12 = vadd.f32 %v2805_v52, %v4210_v54 }
 0x693   :  { %v1708_v15 = vadd.f32 %v4210_v54, %v1707_v22  ;;  %v2806_v60 = vpop.f32.mrb[34].mxu0 }
 0x694   :  { %v1710_v24 = vpop.f32.mrb[35].mxu0  ;;  %v1719_v47 = vadd.f32 %v2806_v60, %v4210_v54  ;;  %v4218_v5 = vadd.f32 %v3106_v4, %v1716_v12  ;;  %v3117_v12 = vld [vmem:[#allocation2 + $0x60] sm:$0xff]  ;;  %v3119_v4 = vld [vmem:[#allocation2 + $0x68] sm:$0xff] }
 0x695   :  { %v4214_v43 = vadd.f32 %v3105_v0, %v1708_v15  ;;  %v1711_v1 = vadd.f32 %v4210_v54, %v1710_v24 }
 0x696   :  { %v4224_v50 = vadd.f32 %v3108_v31, %v1719_v47  ;;  %v1792_v28 = vsel %vm164_vm0, %v4218_v5, 0.0  ;;  %v3118_v47 = vld [vmem:[#allocation2 + $0x70] sm:$0xff]  ;;  %v3120_v31 = vld [vmem:[#allocation2 + $0x78] sm:$0xff] }
 0x697   :  { %v4220_v56 = vadd.f32 %v3107_v49, %v1711_v1  ;;  %v1786_v21 = vsel %vm164_vm0, %v4214_v43, 0.0 }
 0x698   :  { %1787 = vadd.xlane.f32.xlu0 %v1786_v21  ;;  %v1795_v62 = vsel %vm164_vm0, %v4224_v50, 0.0 }
 0x699   :  { %v1789_v26 = vsel %vm164_vm0, %v4220_v56, 0.0 }
 0x69a   :  { %1790 = vadd.xlane.f32.xlu1 %v1789_v26 }
 0x69b   :  { %v2809_v18 = vpop.f32.mrb[36].mxu0 }
 0x69c   :  { %v1723_v39 = vpop.f32.mrb[37].mxu0  ;;  %1793 = vadd.xlane.f32.xlu0 %v1792_v28  ;;  %v1732_v59 = vadd.f32 %v2809_v18, %v4210_v54 }
 0x69d   :  { %v1724_v63 = vadd.f32 %v4210_v54, %v1723_v39  ;;  %v2810_v7 = vpop.f32.mrb[38].mxu0 }
 0x69e   :  { %v1726_v33 = vpop.f32.mrb[39].mxu0  ;;  %1796 = vadd.xlane.f32.xlu1 %v1795_v62  ;;  %v1735_v10 = vadd.f32 %v2810_v7, %v4210_v54  ;;  %v4238_v8 = vadd.f32 %v3110_v9, %v1732_v59 }
 0x69f   :  { %v4234_v61 = vadd.f32 %v3109_v27, %v1724_v63  ;;  %v1727_v17 = vadd.f32 %v4210_v54, %v1726_v33 }
 0x6a0   :  { %v4244_v20 = vadd.f32 %v3112_v37, %v1735_v10  ;;  %v1804_v11 = vsel %vm164_vm0, %v4238_v8, 0.0 }
 0x6a1   :  { %v4240_v42 = vadd.f32 %v3111_v58, %v1727_v17  ;;  %v1798_v2 = vsel %vm164_vm0, %v4234_v61, 0.0 }
 0x6a2   :  { %1799 = vadd.xlane.f32.xlu0 %v1798_v2  ;;  %v1807_v48 = vsel %vm164_vm0, %v4244_v20, 0.0 }
 0x6a3   :  { %v2813_v51 = vpop.f32.mrb[40].mxu0  ;;  %v1801_v23 = vsel %vm164_vm0, %v4240_v42, 0.0 }
 0x6a4   :  { %1802 = vadd.xlane.f32.xlu1 %v1801_v23  ;;  %v1739_v40 = vpop.f32.mrb[41].mxu0  ;;  %v1748_v45 = vadd.f32 %v2813_v51, %v4210_v54 }
 0x6a5   :  { %v1740_v32 = vadd.f32 %v4210_v54, %v1739_v40  ;;  %v2814_v30 = vpop.f32.mrb[42].mxu0 }
 0x6a6   :  { %1805 = vadd.xlane.f32.xlu0 %v1804_v11  ;;  %v1742_v35 = vpop.f32.mrb[43].mxu0  ;;  %v1751_v13 = vadd.f32 %v2814_v30, %v4210_v54  ;;  %v4258_v53 = vadd.f32 %v3114_v55, %v1748_v45 }
 0x6a7   :  { %v4252_v57 = vadd.f32 %v3113_v41, %v1740_v32  ;;  %v1743_v44 = vadd.f32 %v4210_v54, %v1742_v35 }
 0x6a8   :  { %1808 = vadd.xlane.f32.xlu1 %v1807_v48  ;;  %v4264_v38 = vadd.f32 %v3116_v34, %v1751_v13  ;;  %v1816_v52 = vsel %vm164_vm0, %v4258_v53, 0.0 }
 0x6a9   :  { %v4260_v14 = vadd.f32 %v3115_v6, %v1743_v44  ;;  %v1810_v25 = vsel %vm164_vm0, %v4252_v57, 0.0 }
 0x6aa   :  { %1811 = vadd.xlane.f32.xlu0 %v1810_v25  ;;  %v1819_v0 = vsel %vm164_vm0, %v4264_v38, 0.0 }
 0x6ab   :  { %v2817_v19 = vpop.f32.mrb[44].mxu0  ;;  %v1813_v16 = vsel %vm164_vm0, %v4260_v14, 0.0 }
 0x6ac   :  { %1814 = vadd.xlane.f32.xlu1 %v1813_v16  ;;  %v1755_v46 = vpop.f32.mrb[45].mxu0  ;;  %v1764_v36 = vadd.f32 %v2817_v19, %v4210_v54 }
 0x6ad   :  { %v1756_v3 = vadd.f32 %v4210_v54, %v1755_v46  ;;  %v2818_v29 = vpop.f32.mrb[46].mxu0 }
 0x6ae   :  { %1817 = vadd.xlane.f32.xlu0 %v1816_v52  ;;  %v1758_v22 = vpop.f32.mrb[47].mxu0  ;;  %v1767_v60 = vadd.f32 %v2818_v29, %v4210_v54  ;;  %v4278_v1 = vadd.f32 %v3118_v47, %v1764_v36 }
 0x6af   :  { %v4272_v15 = vadd.f32 %v3117_v12, %v1756_v3  ;;  %v1759_v24 = vadd.f32 %v4210_v54, %v1758_v22 }
 0x6b0   :  { %1820 = vadd.xlane.f32.xlu1 %v1819_v0  ;;  %v4284_v26 = vadd.f32 %v3120_v31, %v1767_v60  ;;  %v1828_v18 = vsel %vm164_vm0, %v4278_v1, 0.0 }
 0x6b1   :  { %v4280_v49 = vadd.f32 %v3119_v4, %v1759_v24  ;;  %v1822_v21 = vsel %vm164_vm0, %v4272_v15, 0.0 }
 0x6b2   :  { %1823 = vadd.xlane.f32.xlu0 %v1822_v21  ;;  %v1831_v28 = vsel %vm164_vm0, %v4284_v26, 0.0 }
 0x6b3   :  { %v1825_v54 = vsel %vm164_vm0, %v4280_v49, 0.0 }
 0x6b4   :  { %1826 = vadd.xlane.f32.xlu1 %v1825_v54 }
 0x6b6   :  { %1829 = vadd.xlane.f32.xlu0 %v1828_v18 }
 0x6b8   :  { %1832 = vadd.xlane.f32.xlu1 %v1831_v28 }
 0x725   :  { %v1788_v39 = vpop.xlane.xlu0 %1787 }
 0x726   :  { %v1834_v59 = vmul.f32 0.03125, %v1788_v39 }
 0x727   :  { %v1791_v63 = vpop.xlane.xlu1 %1790 }
 0x728   :  { %v4293_v7 = vsub.f32 %v4214_v43, %v1834_v59  ;;  %v1835_v62 = vmul.f32 0.03125, %v1791_v63 }
 0x729   :  { %v1794_v33 = vpop.xlane.xlu0 %1793 }
 0x72a   :  { %v4296_v27 = vsub.f32 %v4220_v56, %v1835_v62  ;;  %v1836_v10 = vmul.f32 0.03125, %v1794_v33  ;;  %v1866_v17 = vmul.f32 %v4293_v7, %v4293_v7 }
 0x72b   :  { %v1797_v9 = vpop.xlane.xlu1 %1796 }
 0x72c   :  { %v4301_v58 = vsub.f32 %v4218_v5, %v1836_v10  ;;  %v1837_v2 = vmul.f32 0.03125, %v1797_v9  ;;  %v1882_v37 = vsel %vm164_vm0, %v1866_v17, 0.0  ;;  %v1867_v51 = vmul.f32 %v4296_v27, %v4296_v27 }
 0x72d   :  { %1883 = vadd.xlane.f32.xlu0 %v1882_v37 }
 0x72e   :  { %v4307_v23 = vsub.f32 %v4224_v50, %v1837_v2  ;;  %v1885_v40 = vsel %vm164_vm0, %v1867_v51, 0.0  ;;  %v1868_v45 = vmul.f32 %v4301_v58, %v4301_v58 }
 0x72f   :  { %v1800_v32 = vpop.xlane.xlu0 %1799  ;;  %1886 = vadd.xlane.f32.xlu1 %v1885_v40 }
 0x730   :  { %v1838_v30 = vmul.f32 0.03125, %v1800_v32  ;;  %v1888_v11 = vsel %vm164_vm0, %v1868_v45, 0.0  ;;  %v1869_v35 = vmul.f32 %v4307_v23, %v4307_v23 }
 0x731   :  { %v1803_v41 = vpop.xlane.xlu1 %1802  ;;  %1889 = vadd.xlane.f32.xlu0 %v1888_v11 }
 0x732   :  { %v4316_v13 = vsub.f32 %v4234_v61, %v1838_v30  ;;  %v1839_v44 = vmul.f32 0.03125, %v1803_v41  ;;  %v1891_v48 = vsel %vm164_vm0, %v1869_v35, 0.0 }
 0x733   :  { %v1806_v55 = vpop.xlane.xlu0 %1805  ;;  %1892 = vadd.xlane.f32.xlu1 %v1891_v48 }
 0x734   :  { %v4320_v6 = vsub.f32 %v4240_v42, %v1839_v44  ;;  %v1840_v25 = vmul.f32 0.03125, %v1806_v55  ;;  %v1870_v34 = vmul.f32 %v4316_v13, %v4316_v13 }
 0x735   :  { %v1809_v19 = vpop.xlane.xlu1 %1808 }
 0x736   :  { %v4325_v16 = vsub.f32 %v4238_v8, %v1840_v25  ;;  %v1841_v46 = vmul.f32 0.03125, %v1809_v19  ;;  %v1894_v36 = vsel %vm164_vm0, %v1870_v34, 0.0  ;;  %v1871_v3 = vmul.f32 %v4320_v6, %v4320_v6 }
 0x737   :  { %1895 = vadd.xlane.f32.xlu0 %v1894_v36  ;;  %v1812_v29 = vpop.xlane.xlu0 %1811 }
 0x738   :  { %v4331_v52 = vsub.f32 %v4244_v20, %v1841_v46  ;;  %v1842_v22 = vmul.f32 0.03125, %v1812_v29  ;;  %v1897_v12 = vsel %vm164_vm0, %v1871_v3, 0.0  ;;  %v1872_v60 = vmul.f32 %v4325_v16, %v4325_v16 }
 0x739   :  { %v1815_v24 = vpop.xlane.xlu1 %1814  ;;  %1898 = vadd.xlane.f32.xlu1 %v1897_v12 }
 0x73a   :  { %v4337_v0 = vsub.f32 %v4252_v57, %v1842_v22  ;;  %v1843_v47 = vmul.f32 0.03125, %v1815_v24  ;;  %v1900_v4 = vsel %vm164_vm0, %v1872_v60, 0.0  ;;  %v1873_v21 = vmul.f32 %v4331_v52, %v4331_v52 }
 0x73b   :  { %1901 = vadd.xlane.f32.xlu0 %v1900_v4  ;;  %v1818_v31 = vpop.xlane.xlu0 %1817  ;;  %v2904_v4 = vld [vmem:[#allocation11 + $0x8] sm:$0xff]  }
 0x73c   :  { %v4343_v54 = vsub.f32 %v4260_v14, %v1843_v47  ;;  %v1844_v18 = vmul.f32 0.03125, %v1818_v31  ;;  %v1903_v28 = vsel %vm164_vm0, %v1873_v21, 0.0  ;;  %v1874_v39 = vmul.f32 %v4337_v0, %v4337_v0  ;;  %v2903_v47 = vld [vmem:[#allocation11] sm:$0xff]   ;;  %v2905_v21 = vld [vmem:[#allocation13] sm:$0xff]   ;;  %v2906_v31 = vld [vmem:[#allocation13 + $0x8] sm:$0xff]  }
 0x73d   :  { %v1821_v59 = vpop.xlane.xlu1 %1820  ;;  %1904 = vadd.xlane.f32.xlu1 %v1903_v28  ;;  %2819 = vmatprep.subr.bf16.mxu1 %v2903_v47 }
 0x73e   :  { %v4349_v63 = vsub.f32 %v4258_v53, %v1844_v18  ;;  %v1845_v62 = vmul.f32 0.03125, %v1821_v59  ;;  %v1906_v33 = vsel %vm164_vm0, %v1874_v39, 0.0  ;;  %v1875_v10 = vmul.f32 %v4343_v54, %v4343_v54  ;;  %2820 = vmatpush3.bf16.msra.mxu1 %v2903_v47  ;;  %2839 = vmatprep.subr.bf16.mxu0 %v2905_v21 }
 0x73f   :  { %1907 = vadd.xlane.f32.xlu0 %v1906_v33  ;;  %v1824_v17 = vpop.xlane.xlu0 %1823  ;;  %2821 = vmatprep.subr.bf16.mxu1 %v2904_v4 }
 0x740   :  { %v4355_v9 = vsub.f32 %v4264_v38, %v1845_v62  ;;  %v1846_v2 = vmul.f32 0.03125, %v1824_v17  ;;  %v1909_v37 = vsel %vm164_vm0, %v1875_v10, 0.0  ;;  %v1876_v51 = vmul.f32 %v4349_v63, %v4349_v63  ;;  %2840 = vmatpush3.bf16.msra.mxu0 %v2905_v21 }
 0x741   :  { %1910 = vadd.xlane.f32.xlu1 %v1909_v37  ;;  %v1827_v40 = vpop.xlane.xlu1 %1826  ;;  %2841 = vmatprep.subr.bf16.mxu0 %v2906_v31 }
 0x742   :  { %v4361_v45 = vsub.f32 %v4272_v15, %v1846_v2  ;;  %v1847_v32 = vmul.f32 0.03125, %v1827_v40  ;;  %v1912_v30 = vsel %vm164_vm0, %v1876_v51, 0.0  ;;  %v1877_v11 = vmul.f32 %v4355_v9, %v4355_v9  ;;  %2822 = vmatpush3.bf16.msra.mxu1 %v2904_v4 }
 0x743   :  { %1913 = vadd.xlane.f32.xlu0 %v1912_v30  ;;  %v1830_v35 = vpop.xlane.xlu0 %1829 }
 0x744   :  { %v4367_v41 = vsub.f32 %v4280_v49, %v1847_v32  ;;  %v1848_v44 = vmul.f32 0.03125, %v1830_v35  ;;  %v1915_v48 = vsel %vm164_vm0, %v1877_v11, 0.0  ;;  %v1878_v55 = vmul.f32 %v4361_v45, %v4361_v45  ;;  %2842 = vmatpush3.bf16.msra.mxu0 %v2906_v31  ;;  %v4393_v31 = vld [vmem:[#allocation7 + $0x5] ss:$0 sm:$0xff] }
 0x745   :  { %1916 = vadd.xlane.f32.xlu1 %v1915_v48  ;;  %v1833_v25 = vpop.xlane.xlu1 %1832 }
 0x746   :  { %v4373_v34 = vsub.f32 %v4278_v1, %v1848_v44  ;;  %v1849_v19 = vmul.f32 0.03125, %v1833_v25  ;;  %v1918_v46 = vsel %vm164_vm0, %v1878_v55, 0.0  ;;  %v1879_v36 = vmul.f32 %v4367_v41, %v4367_v41  ;;  %v4388_v25 = vld [vmem:[#allocation7 + $0x4] ss:$0 sm:$0xff] }
 0x747   :  { %1919 = vadd.xlane.f32.xlu0 %v1918_v46 }
 0x748   :  { %v4379_v3 = vsub.f32 %v4284_v26, %v1849_v19  ;;  %v1921_v29 = vsel %vm164_vm0, %v1879_v36, 0.0  ;;  %v1880_v22 = vmul.f32 %v4373_v34, %v4373_v34 }
 0x749   :  { %1922 = vadd.xlane.f32.xlu1 %v1921_v29 }
 0x74a   :  { %v1924_v12 = vsel %vm164_vm0, %v1880_v22, 0.0  ;;  %v1881_v60 = vmul.f32 %v4379_v3, %v4379_v3 }
 0x74b   :  { %1925 = vadd.xlane.f32.xlu0 %v1924_v12 }
 0x74c   :  { %v1927_v24 = vsel %vm164_vm0, %v1881_v60, 0.0 }
 0x74d   :  { %1928 = vadd.xlane.f32.xlu1 %v1927_v24 }
 0x7ba   :  { %v1884_v18 = vpop.xlane.xlu0 %1883 }
 0x7bb   :  { %v1930_v28 = vmul.f32 0.03125, %v1884_v18 }
 0x7bc   :  { %v1887_v39 = vpop.xlane.xlu1 %1886 }
 0x7bd   :  { %v1946_v59 = vadd.f32 1e-05, %v1930_v28  ;;  %v1931_v62 = vmul.f32 0.03125, %v1887_v39 }
 0x7be   :  { %v1890_v33 = vpop.xlane.xlu0 %1889 }
 0x7bf   :  { %3041 = vrsqrt.f32 %v1946_v59  ;;  %v1947_v10 = vadd.f32 1e-05, %v1931_v62  ;;  %v1932_v17 = vmul.f32 0.03125, %v1890_v33 }
 0x7c0   :  { %v1893_v2 = vpop.xlane.xlu1 %1892 }
 0x7c1   :  { %3043 = vrsqrt.f32 %v1947_v10  ;;  %v1948_v37 = vadd.f32 1e-05, %v1932_v17  ;;  %v1933_v51 = vmul.f32 0.03125, %v1893_v2 }
 0x7c3   :  { %3045 = vrsqrt.f32 %v1948_v37  ;;  %v1949_v40 = vadd.f32 1e-05, %v1933_v51 }
 0x7c4   :  { %v1896_v32 = vpop.xlane.xlu0 %1895 }
 0x7c5   :  { %3047 = vrsqrt.f32 %v1949_v40  ;;  %v1934_v30 = vmul.f32 0.03125, %v1896_v32 }
 0x7c6   :  { %v1899_v11 = vpop.xlane.xlu1 %1898 }
 0x7c7   :  { %v1950_v35 = vadd.f32 1e-05, %v1934_v30  ;;  %v1935_v44 = vmul.f32 0.03125, %v1899_v11 }
 0x7c8   :  { %v1902_v48 = vpop.xlane.xlu0 %1901 }
 0x7c9   :  { %v3042_v55 = vpop.eup %3041  ;;  %3049 = vrsqrt.f32 %v1950_v35  ;;  %v1951_v19 = vadd.f32 1e-05, %v1935_v44  ;;  %v1936_v46 = vmul.f32 0.03125, %v1902_v48 }
 0x7ca   :  { %v1978_v36 = vmul.f32 %v3042_v55, %v4293_v7  ;;  %v1905_v29 = vpop.xlane.xlu1 %1904 }
 0x7cb   :  { %v3044_v22 = vpop.eup %3043  ;;  %3051 = vrsqrt.f32 %v1951_v19  ;;  %v1952_v12 = vadd.f32 1e-05, %v1936_v46  ;;  %v1937_v60 = vmul.f32 0.03125, %v1905_v29 }
 0x7cc   :  { %v1979_v24 = vmul.f32 %v3044_v22, %v4296_v27  ;;  %v1908_v47 = vpop.xlane.xlu0 %1907  ;;  %v1998_v4 = vmul.f32 %v4388_v25, %v1978_v36 }
 0x7cd   :  { %v3046_v21 = vpop.eup %3045  ;;  %3053 = vrsqrt.f32 %v1952_v12  ;;  %v1953_v18 = vadd.f32 1e-05, %v1937_v60  ;;  %v1938_v28 = vmul.f32 0.03125, %v1908_v47 }
 0x7ce   :  { %v1980_v39 = vmul.f32 %v3046_v21, %v4301_v58  ;;  %v1911_v59 = vpop.xlane.xlu1 %1910  ;;  %v1999_v7 = vmul.f32 %v4388_v25, %v1979_v24  ;;  %v2018_v37 = vadd.f32 %v4393_v31, %v1998_v4 }
 0x7cf   :  { %v3048_v62 = vpop.eup %3047  ;;  %3055 = vrsqrt.f32 %v1953_v18  ;;  %v1954_v33 = vadd.f32 1e-05, %v1938_v28  ;;  %v1939_v10 = vmul.f32 0.03125, %v1911_v59 }
 0x7d0   :  { %v2000_v27 = vmul.f32 %v4388_v25, %v1980_v39  ;;  %v1981_v17 = vmul.f32 %v3048_v62, %v4307_v23  ;;  %v1914_v2 = vpop.xlane.xlu0 %1913  ;;  %v2019_v51 = vadd.f32 %v4393_v31, %v1999_v7 }
 0x7d1   :  { %3057 = vrsqrt.f32 %v1954_v33  ;;  %v1955_v40 = vadd.f32 1e-05, %v1939_v10  ;;  %v1940_v32 = vmul.f32 0.03125, %v1914_v2 }
 0x7d2   :  { %v2001_v58 = vmul.f32 %v4388_v25, %v1981_v17  ;;  %v1917_v30 = vpop.xlane.xlu1 %1916  ;;  %v2034_v11 = vpack.c.bf16 %v2019_v51, %v2018_v37  ;;  %v2020_v55 = vadd.f32 %v4393_v31, %v2000_v27 }
 0x7d3   :  { %v3050_v35 = vpop.eup %3049  ;;  %3059 = vrsqrt.f32 %v1955_v40  ;;  %v1956_v44 = vadd.f32 1e-05, %v1940_v32  ;;  %v1941_v48 = vmul.f32 0.03125, %v1917_v30 }
 0x7d4   :  { %v2021_v23 = vadd.f32 %v4393_v31, %v2001_v58  ;;  %v1982_v19 = vmul.f32 %v3050_v35, %v4316_v13  ;;  %v1920_v46 = vpop.xlane.xlu0 %1919  ;;  %2823 = vmatprep.mubr.msk.bf16.mxu1 %vm164_vm0, %v2034_v11 }
 0x7d5   :  { %v3052_v36 = vpop.eup %3051  ;;  %3061 = vrsqrt.f32 %v1956_v44  ;;  %v1957_v29 = vadd.f32 1e-05, %v1941_v48  ;;  %v1942_v22 = vmul.f32 0.03125, %v1920_v46 }
 0x7d6   :  { %v1983_v12 = vmul.f32 %v3052_v36, %v4320_v6  ;;  %v1923_v60 = vpop.xlane.xlu1 %1922  ;;  %v2035_v24 = vpack.c.bf16 %v2021_v23, %v2020_v55  ;;  %v2002_v47 = vmul.f32 %v4388_v25, %v1982_v19 }
 0x7d7   :  { %v3054_v4 = vpop.eup %3053  ;;  %3063 = vrsqrt.f32 %v1957_v29  ;;  %v1958_v21 = vadd.f32 1e-05, %v1942_v22  ;;  %v1943_v18 = vmul.f32 0.03125, %v1923_v60 }
 0x7d8   :  { %v1984_v28 = vmul.f32 %v3054_v4, %v4325_v16  ;;  %v1926_v13 = vpop.xlane.xlu0 %1925  ;;  %2824 = vmatmul.mubr.msk.bf16.vlgmr.msra.gmra.mrb[48].mxu1 %vm164_vm0, %v2035_v24  ;;  %v2003_v39 = vmul.f32 %v4388_v25, %v1983_v12  ;;  %v2022_v10 = vadd.f32 %v4393_v31, %v2002_v47 }
 0x7d9   :  { %v3056_v59 = vpop.eup %3055  ;;  %3065 = vrsqrt.f32 %v1958_v21  ;;  %v1959_v7 = vadd.f32 1e-05, %v1943_v18  ;;  %v1944_v62 = vmul.f32 0.03125, %v1926_v13 }
 0x7da   :  { %v1985_v6 = vmul.f32 %v3056_v59, %v4331_v52  ;;  %v1929_v33 = vpop.xlane.xlu1 %1928  ;;  %v2023_v27 = vadd.f32 %v4393_v31, %v2003_v39  ;;  %v2004_v17 = vmul.f32 %v4388_v25, %v1984_v28 }
 0x7db   :  { %v3058_v2 = vpop.eup %3057  ;;  %3067 = vrsqrt.f32 %v1959_v7  ;;  %v1960_v16 = vadd.f32 1e-05, %v1944_v62  ;;  %v1945_v37 = vmul.f32 0.03125, %v1929_v33 }
 0x7dc   :  { %v1986_v51 = vmul.f32 %v3058_v2, %v4337_v0  ;;  %v2036_v40 = vpack.c.bf16 %v2023_v27, %v2022_v10  ;;  %v2005_v32 = vmul.f32 %v4388_v25, %v1985_v6  ;;  %v2024_v11 = vadd.f32 %v4393_v31, %v2004_v17  ;;  %v2908_v17 = vld [vmem:[#allocation13 + $0x18] sm:$0xff]   ;;  %v2909_v2 = vld [vmem:[#allocation13 + $0x20] sm:$0xff]  }
 0x7dd   :  { %v3060_v58 = vpop.eup %3059  ;;  %3069 = vrsqrt.f32 %v1960_v16  ;;  %v1961_v30 = vadd.f32 1e-05, %v1945_v37  ;;  %v2910_v16 = vld [vmem:[#allocation13 + $0x28] sm:$0xff]   ;;  %v2912_v37 = vld [vmem:[#allocation13 + $0x38] sm:$0xff]  }
 0x7de   :  { %v1987_v52 = vmul.f32 %v3060_v58, %v4343_v54  ;;  %2827 = vmatprep.mubr.msk.bf16.mxu1 %vm164_vm0, %v2036_v40  ;;  %v2025_v35 = vadd.f32 %v4393_v31, %v2005_v32  ;;  %v2006_v44 = vmul.f32 %v4388_v25, %v1986_v51 }
 0x7df   :  { %v3062_v48 = vpop.eup %3061  ;;  %3071 = vrsqrt.f32 %v1961_v30 }
 0x7e0   :  { %v1988_v0 = vmul.f32 %v3062_v48, %v4349_v63  ;;  %v2037_v55 = vpack.c.bf16 %v2025_v35, %v2024_v11  ;;  %v2007_v23 = vmul.f32 %v4388_v25, %v1987_v52  ;;  %v2026_v54 = vadd.f32 %v4393_v31, %v2006_v44 }
 0x7e1   :  { %v3064_v19 = vpop.eup %3063 }
 0x7e2   :  { %v1989_v46 = vmul.f32 %v3064_v19, %v4355_v9  ;;  %2828 = vmatmul.mubr.msk.bf16.gmra.mrb[52].mxu1 %vm164_vm0, %v2037_v55  ;;  %v2027_v36 = vadd.f32 %v4393_v31, %v2007_v23  ;;  %v2008_v29 = vmul.f32 %v4388_v25, %v1988_v0 }
 0x7e3   :  { %v3066_v22 = vpop.eup %3065 }
 0x7e4   :  { %v1990_v12 = vmul.f32 %v3066_v22, %v4361_v45  ;;  %v2038_v60 = vpack.c.bf16 %v2027_v36, %v2026_v54  ;;  %v2009_v63 = vmul.f32 %v4388_v25, %v1989_v46  ;;  %v2028_v9 = vadd.f32 %v4393_v31, %v2008_v29 }
 0x7e5   :  { %v3068_v24 = vpop.eup %3067 }
 0x7e6   :  { %v1991_v47 = vmul.f32 %v3068_v24, %v4367_v41  ;;  %2831 = vmatprep.mubr.msk.bf16.mxu1 %vm164_vm0, %v2038_v60  ;;  %v2029_v4 = vadd.f32 %v4393_v31, %v2009_v63  ;;  %v2010_v21 = vmul.f32 %v4388_v25, %v1990_v12 }
 0x7e7   :  { %v3070_v18 = vpop.eup %3069 }
 0x7e8   :  { %v1992_v28 = vmul.f32 %v3070_v18, %v4373_v34  ;;  %v2039_v13 = vpack.c.bf16 %v2029_v4, %v2028_v9  ;;  %v2011_v45 = vmul.f32 %v4388_v25, %v1991_v47  ;;  %v2030_v41 = vadd.f32 %v4393_v31, %v2010_v21 }
 0x7e9   :  { %v3072_v39 = vpop.eup %3071 }
 0x7ea   :  { %v1993_v59 = vmul.f32 %v3072_v39, %v4379_v3  ;;  %2832 = vmatmul.mubr.msk.bf16.gmra.mrb[56].mxu1 %vm164_vm0, %v2039_v13  ;;  %v2031_v7 = vadd.f32 %v4393_v31, %v2011_v45  ;;  %v2012_v62 = vmul.f32 %v4388_v25, %v1992_v28  ;;  %v2907_v3 = vld [vmem:[#allocation13 + $0x10] sm:$0xff]  }
 0x7eb   :  { %2843 = vmatprep.subr.bf16.mxu0 %v2907_v3 }
 0x7ec   :  { %v2040_v6 = vpack.c.bf16 %v2031_v7, %v2030_v41  ;;  %v2013_v33 = vmul.f32 %v4388_v25, %v1993_v59  ;;  %v2032_v34 = vadd.f32 %v4393_v31, %v2012_v62  ;;  %2844 = vmatpush3.bf16.msra.mxu0 %v2907_v3  ;;  %v2911_v25 = vld [vmem:[#allocation13 + $0x30] sm:$0xff]  }
 0x7ed   :  { %2845 = vmatprep.subr.bf16.mxu0 %v2908_v17 }
 0x7ee   :  { %2835 = vmatprep.mubr.msk.bf16.mxu1 %vm164_vm0, %v2040_v6  ;;  %v2033_v10 = vadd.f32 %v4393_v31, %v2013_v33  ;;  %v4448_v31 = vld [vmem:[#allocation10] ss:$0 sm:$0xff] }
 0x7f0   :  { %v2041_v27 = vpack.c.bf16 %v2033_v10, %v2032_v34  ;;  %2846 = vmatpush3.bf16.msra.mxu0 %v2908_v17 }
 0x7f1   :  { %2847 = vmatprep.subr.bf16.mxu0 %v2909_v2 }
 0x7f2   :  { %2836 = vmatmul.mubr.msk.bf16.gmra.mrb[60].mxu1 %vm164_vm0, %v2041_v27 }
 0x7f4   :  { %2848 = vmatpush3.bf16.msra.mxu0 %v2909_v2 }
 0x7f5   :  { %2849 = vmatprep.subr.bf16.mxu0 %v2910_v16 }
 0x7f8   :  { %2850 = vmatpush3.bf16.msra.mxu0 %v2910_v16 }
 0x7f9   :  { %2851 = vmatprep.subr.bf16.mxu0 %v2911_v25 }
 0x7fc   :  { %2852 = vmatpush3.bf16.msra.mxu0 %v2911_v25 }
 0x7fd   :  { %2853 = vmatprep.subr.bf16.mxu0 %v2912_v37 }
 0x800   :  { %2854 = vmatpush3.bf16.msra.mxu0 %v2912_v37 }
 0x8ab   :  { %v2825_v51 = vpop.f32.mrb[48].mxu1 }
 0x8ac   :  { %v2132_v40 = vadd.f32 %v2825_v51, %v4448_v31  ;;  %v2123_v32 = vpop.f32.mrb[49].mxu1 }
 0x8ad   :  { %v2124_v58 = vadd.f32 %v4448_v31, %v2123_v32  ;;  %v2826_v30 = vpop.f32.mrb[50].mxu1 }
 0x8ae   :  { %v2204_v52 = vmul.f32 0.70710677, %v2132_v40  ;;  %v2135_v11 = vadd.f32 %v2826_v30, %v4448_v31  ;;  %v2126_v35 = vpop.f32.mrb[51].mxu1  ;;  %v2188_v45 = vmul.f32 0.5, %v2132_v40 }
 0x8af   :  { %v2202_v44 = vmul.f32 0.70710677, %v2124_v58  ;;  %v2127_v48 = vadd.f32 %v4448_v31, %v2126_v35  ;;  %v2186_v7 = vmul.f32 0.5, %v2124_v58 }
 0x8b0   :  { %3073 = verf.f32 %v2204_v52  ;;  %v2205_v0 = vmul.f32 0.70710677, %v2135_v11  ;;  %v2189_v39 = vmul.f32 0.5, %v2135_v11 }
 0x8b1   :  { %3075 = verf.f32 %v2202_v44  ;;  %v2203_v55 = vmul.f32 0.70710677, %v2127_v48  ;;  %v2187_v62 = vmul.f32 0.5, %v2127_v48 }
 0x8b2   :  { %3077 = verf.f32 %v2205_v0 }
 0x8b3   :  { %3079 = verf.f32 %v2203_v55 }
 0x8b5   :  { %v2829_v23 = vpop.f32.mrb[52].mxu1 }
 0x8b6   :  { %v2148_v19 = vadd.f32 %v2829_v23, %v4448_v31  ;;  %v2139_v46 = vpop.f32.mrb[53].mxu1 }
 0x8b7   :  { %v2140_v54 = vadd.f32 %v4448_v31, %v2139_v46  ;;  %v2830_v36 = vpop.f32.mrb[54].mxu1 }
 0x8b8   :  { %v2208_v29 = vmul.f32 0.70710677, %v2148_v19  ;;  %v2151_v22 = vadd.f32 %v2830_v36, %v4448_v31  ;;  %v2142_v12 = vpop.f32.mrb[55].mxu1 }
 0x8b9   :  { %v2206_v60 = vmul.f32 0.70710677, %v2140_v54  ;;  %v2143_v63 = vadd.f32 %v4448_v31, %v2142_v12  ;;  %v2192_v12 = vmul.f32 0.5, %v2148_v19 }
 0x8ba   :  { %v3074_v24 = vpop.eup %3073  ;;  %3081 = verf.f32 %v2208_v29  ;;  %v2209_v47 = vmul.f32 0.70710677, %v2151_v22 }
 0x8bb   :  { %v3076_v9 = vpop.eup %3075  ;;  %v2236_v4 = vadd.f32 1.0, %v3074_v24  ;;  %3083 = verf.f32 %v2206_v60  ;;  %v2207_v21 = vmul.f32 0.70710677, %v2143_v63  ;;  %v2193_v60 = vmul.f32 0.5, %v2151_v22 }
 0x8bc   :  { %v3078_v18 = vpop.eup %3077  ;;  %v2234_v28 = vadd.f32 1.0, %v3076_v9  ;;  %3085 = verf.f32 %v2209_v47 }
 0x8bd   :  { %v3080_v13 = vpop.eup %3079  ;;  %v2237_v59 = vadd.f32 1.0, %v3078_v18  ;;  %3087 = verf.f32 %v2207_v21  ;;  %v2833_v41 = vpop.f32.mrb[56].mxu1  ;;  %v2252_v10 = vmul.f32 %v2236_v4, %v2188_v45  ;;  %v2190_v4 = vmul.f32 0.5, %v2140_v54 }
 0x8be   :  { %v2235_v6 = vadd.f32 1.0, %v3080_v13  ;;  %v4459_v33 = vadd.f32 %v2833_v41, %v4448_v31  ;;  %v2155_v34 = vpop.f32.mrb[57].mxu1  ;;  %v2250_v2 = vmul.f32 %v2234_v28, %v2186_v7  ;;  %v2191_v21 = vmul.f32 0.5, %v2143_v63 }
 0x8bf   :  { %v2253_v27 = vmul.f32 %v2237_v59, %v2189_v39  ;;  %v4462_v3 = vadd.f32 %v4448_v31, %v2155_v34  ;;  %v2834_v17 = vpop.f32.mrb[58].mxu1 }
 0x8c0   :  { %v2251_v16 = vmul.f32 %v2235_v6, %v2187_v62  ;;  %v2212_v25 = vmul.f32 0.70710677, %v4459_v33  ;;  %v2167_v37 = vadd.f32 %v2834_v17, %v4448_v31  ;;  %v2158_v51 = vpop.f32.mrb[59].mxu1 }
 0x8c1   :  { %v2267_v40 = vpack.c.bf16 %v2253_v27, %v2252_v10  ;;  %v2210_v32 = vmul.f32 0.70710677, %v4462_v3  ;;  %v2159_v58 = vadd.f32 %v4448_v31, %v2158_v51 }
 0x8c2   :  { %3089 = verf.f32 %v2212_v25  ;;  %v2213_v30 = vmul.f32 0.70710677, %v2167_v37  ;;  %v2266_v52 = vpack.c.bf16 %v2251_v16, %v2250_v2  ;;  %v2196_v25 = vmul.f32 0.5, %v4459_v33 }
 0x8c3   :  { %3091 = verf.f32 %v2210_v32  ;;  %v2211_v11 = vmul.f32 0.70710677, %v2159_v58  ;;  %v2197_v51 = vmul.f32 0.5, %v2167_v37  ;;  %v2195_v32 = vmul.f32 0.5, %v2159_v58 }
 0x8c4   :  { %v3082_v35 = vpop.eup %3081  ;;  %3093 = verf.f32 %v2213_v30  ;;  %2855 = vmatprep.mubr.bf16.mxu0 %v2266_v52 }
 0x8c5   :  { %v3084_v44 = vpop.eup %3083  ;;  %v2240_v48 = vadd.f32 1.0, %v3082_v35  ;;  %3095 = verf.f32 %v2211_v11  ;;  %v2837_v0 = vpop.f32.mrb[60].mxu1  ;;  %2856 = vmatmul.mubr.bf16.vlgmr.msra.gmra.mrb[48].mxu0 %v2267_v40 }
 0x8c6   :  { %v3086_v55 = vpop.eup %3085  ;;  %v2238_v23 = vadd.f32 1.0, %v3084_v44  ;;  %v2180_v46 = vadd.f32 %v2837_v0, %v4448_v31  ;;  %v2171_v36 = vpop.f32.mrb[61].mxu1 }
 0x8c7   :  { %v3088_v29 = vpop.eup %3087  ;;  %v2241_v24 = vadd.f32 1.0, %v3086_v55  ;;  %v2172_v47 = vadd.f32 %v4448_v31, %v2171_v36  ;;  %v2838_v9 = vpop.f32.mrb[62].mxu1  ;;  %v2256_v45 = vmul.f32 %v2240_v48, %v2192_v12 }
 0x8c8   :  { %v2239_v18 = vadd.f32 1.0, %v3088_v29  ;;  %v2216_v28 = vmul.f32 0.70710677, %v2180_v46  ;;  %v2174_v13 = vpop.f32.mrb[63].mxu1  ;;  %v2183_v41 = vadd.f32 %v2838_v9, %v4448_v31  ;;  %v2254_v7 = vmul.f32 %v2238_v23, %v2190_v4 }
 0x8c9   :  { %v2257_v39 = vmul.f32 %v2241_v24, %v2193_v60  ;;  %v2214_v59 = vmul.f32 0.70710677, %v2172_v47  ;;  %v2175_v19 = vadd.f32 %v4448_v31, %v2174_v13  ;;  %v2194_v31 = vmul.f32 0.5, %v4462_v3 }
 0x8ca   :  { %v2255_v62 = vmul.f32 %v2239_v18, %v2191_v21  ;;  %3097 = verf.f32 %v2216_v28  ;;  %v2217_v22 = vmul.f32 0.70710677, %v2183_v41  ;;  %v2200_v37 = vmul.f32 0.5, %v2180_v46 }
 0x8cb   :  { %3099 = verf.f32 %v2214_v59  ;;  %v2269_v6 = vpack.c.bf16 %v2257_v39, %v2256_v45  ;;  %v2215_v10 = vmul.f32 0.70710677, %v2175_v19  ;;  %v2201_v60 = vmul.f32 0.5, %v2183_v41  ;;  %v2568_v39 = vld [vmem:[#allocation7 + $0xa] ss:$0 sm:$0xff] }
 0x8cc   :  { %v3090_v34 = vpop.eup %3089  ;;  %v2268_v54 = vpack.c.bf16 %v2255_v62, %v2254_v7  ;;  %3101 = verf.f32 %v2217_v22  ;;  %v2198_v3 = vmul.f32 0.5, %v2172_v47  ;;  %v2199_v58 = vmul.f32 0.5, %v2175_v19 }
 0x8cd   :  { %v3092_v63 = vpop.eup %3091  ;;  %v2244_v27 = vadd.f32 1.0, %v3090_v34  ;;  %3103 = verf.f32 %v2215_v10 }
 0x8ce   :  { %v3094_v17 = vpop.eup %3093  ;;  %v2242_v2 = vadd.f32 1.0, %v3092_v63  ;;  %2859 = vmatprep.mubr.bf16.mxu0 %v2268_v54 }
 0x8cf   :  { %v3096_v16 = vpop.eup %3095  ;;  %v2245_v40 = vadd.f32 1.0, %v3094_v17  ;;  %2860 = vmatmul.mubr.bf16.gmra.mrb[52].mxu0 %v2269_v6  ;;  %v2260_v52 = vmul.f32 %v2244_v27, %v2196_v25 }
 0x8d0   :  { %v2243_v30 = vadd.f32 1.0, %v3096_v16  ;;  %v2258_v35 = vmul.f32 %v2242_v2, %v2194_v31 }
 0x8d1   :  { %v2261_v11 = vmul.f32 %v2245_v40, %v2197_v51 }
 0x8d2   :  { %v2259_v44 = vmul.f32 %v2243_v30, %v2195_v32 }
 0x8d3   :  { %v2271_v48 = vpack.c.bf16 %v2261_v11, %v2260_v52 }
 0x8d4   :  { %v3098_v0 = vpop.eup %3097  ;;  %v2270_v55 = vpack.c.bf16 %v2259_v44, %v2258_v35 }
 0x8d5   :  { %v3100_v23 = vpop.eup %3099  ;;  %v2248_v36 = vadd.f32 1.0, %v3098_v0 }
 0x8d6   :  { %2863 = vmatprep.mubr.bf16.mxu0 %v2270_v55  ;;  %v3102_v29 = vpop.eup %3101  ;;  %v2246_v12 = vadd.f32 1.0, %v3100_v23 }
 0x8d7   :  { %2864 = vmatmul.mubr.bf16.gmra.mrb[56].mxu0 %v2271_v48  ;;  %v3104_v33 = vpop.eup %3103  ;;  %v2249_v24 = vadd.f32 1.0, %v3102_v29  ;;  %v2264_v4 = vmul.f32 %v2248_v36, %v2200_v37 }
 0x8d8   :  { %v2247_v9 = vadd.f32 1.0, %v3104_v33  ;;  %v2262_v18 = vmul.f32 %v2246_v12, %v2198_v3 }
 0x8d9   :  { %v2265_v21 = vmul.f32 %v2249_v24, %v2201_v60 }
 0x8da   :  { %v2263_v28 = vmul.f32 %v2247_v9, %v2199_v58 }
 0x8db   :  { %v2273_v13 = vpack.c.bf16 %v2265_v21, %v2264_v4 }
 0x8dc   :  { %v2272_v45 = vpack.c.bf16 %v2263_v28, %v2262_v18 }
 0x8de   :  { %2867 = vmatprep.mubr.bf16.mxu0 %v2272_v45 }
 0x8df   :  { %2868 = vmatmul.mubr.bf16.gmra.mrb[60].mxu0 %v2273_v13 }
 0x998   :  { %v2857_v59 = vpop.f32.mrb[48].mxu0 }
 0x999   :  { %v2385_v7 = vadd.f32 %v2857_v59, %v2568_v39  ;;  %v2376_v62 = vpop.f32.mrb[49].mxu0 }
 0x99a   :  { %v2377_v22 = vadd.f32 %v2568_v39, %v2376_v62  ;;  %v2858_v6 = vpop.f32.mrb[50].mxu0 }
 0x99b   :  { %v2441_v46 = vadd.f32 %v2385_v7, %v4218_v5  ;;  %v2388_v41 = vadd.f32 %v2858_v6, %v2568_v39  ;;  %v2379_v47 = vpop.f32.mrb[51].mxu0 }
 0x99c   :  { %v2439_v19 = vadd.f32 %v2377_v22, %v4214_v43  ;;  %v2380_v34 = vadd.f32 %v2568_v39, %v2379_v47 }
 0x99d   :  { %2457 = vst.msk [vmem:[#allocation14 + $0x10] sm:$0xff] %vm164_vm0, %v2441_v46  ;;  %v2442_v10 = vadd.f32 %v2388_v41, %v4224_v50 }
 0x99e   :  { %2455 = vst.msk [vmem:[#allocation14] sm:$0xff] %vm164_vm0, %v2439_v19  ;;  %v2440_v54 = vadd.f32 %v2380_v34, %v4220_v56 }
 0x99f   :  { %2458 = vst.msk [vmem:[#allocation14 + $0x18] sm:$0xff] %vm164_vm0, %v2442_v10 }
 0x9a0   :  { %2456 = vst.msk [vmem:[#allocation14 + $0x8] sm:$0xff] %vm164_vm0, %v2440_v54 }
 0x9a2   :  { %v2861_v63 = vpop.f32.mrb[52].mxu0 }
 0x9a3   :  { %v2401_v27 = vadd.f32 %v2861_v63, %v2568_v39  ;;  %v2392_v5 = vpop.f32.mrb[53].mxu0 }
 0x9a4   :  { %v2393_v17 = vadd.f32 %v2568_v39, %v2392_v5  ;;  %v2862_v2 = vpop.f32.mrb[54].mxu0 }
 0x9a5   :  { %v2445_v43 = vadd.f32 %v2401_v27, %v4238_v8  ;;  %v2404_v16 = vadd.f32 %v2862_v2, %v2568_v39  ;;  %v2395_v25 = vpop.f32.mrb[55].mxu0 }
 0x9a6   :  { %v2443_v51 = vadd.f32 %v2393_v17, %v4234_v61  ;;  %v2396_v50 = vadd.f32 %v2568_v39, %v2395_v25 }
 0x9a7   :  { %2461 = vst.msk [vmem:[#allocation14 + $0x30] sm:$0xff] %vm164_vm0, %v2445_v43  ;;  %v2446_v56 = vadd.f32 %v2404_v16, %v4244_v20 }
 0x9a8   :  { %2459 = vst.msk [vmem:[#allocation14 + $0x20] sm:$0xff] %vm164_vm0, %v2443_v51  ;;  %v2444_v40 = vadd.f32 %v2396_v50, %v4240_v42 }
 0x9a9   :  { %2462 = vst.msk [vmem:[#allocation14 + $0x38] sm:$0xff] %vm164_vm0, %v2446_v56 }
 0x9aa   :  { %2460 = vst.msk [vmem:[#allocation14 + $0x28] sm:$0xff] %vm164_vm0, %v2444_v40  ;;  %v2865_v31 = vpop.f32.mrb[56].mxu0 }
 0x9ab   :  { %v2417_v32 = vadd.f32 %v2865_v31, %v2568_v39  ;;  %v2408_v8 = vpop.f32.mrb[57].mxu0 }
 0x9ac   :  { %v2409_v30 = vadd.f32 %v2568_v39, %v2408_v8  ;;  %v2866_v52 = vpop.f32.mrb[58].mxu0 }
 0x9ad   :  { %v2449_v61 = vadd.f32 %v2417_v32, %v4258_v53  ;;  %v2420_v11 = vadd.f32 %v2866_v52, %v2568_v39  ;;  %v2411_v35 = vpop.f32.mrb[59].mxu0 }
 0x9ae   :  { %v2447_v44 = vadd.f32 %v2409_v30, %v4252_v57  ;;  %v2412_v20 = vadd.f32 %v2568_v39, %v2411_v35 }
 0x9af   :  { %2465 = vst.msk [vmem:[#allocation14 + $0x50] sm:$0xff] %vm164_vm0, %v2449_v61  ;;  %v2450_v42 = vadd.f32 %v2420_v11, %v4264_v38 }
 0x9b0   :  { %2463 = vst.msk [vmem:[#allocation14 + $0x40] sm:$0xff] %vm164_vm0, %v2447_v44  ;;  %v2448_v48 = vadd.f32 %v2412_v20, %v4260_v14 }
 0x9b1   :  { %2466 = vst.msk [vmem:[#allocation14 + $0x58] sm:$0xff] %vm164_vm0, %v2450_v42 }
 0x9b2   :  { %2464 = vst.msk [vmem:[#allocation14 + $0x48] sm:$0xff] %vm164_vm0, %v2448_v48  ;;  %v2869_v0 = vpop.f32.mrb[60].mxu0 }
 0x9b3   :  { %v2433_v55 = vadd.f32 %v2869_v0, %v2568_v39  ;;  %v2424_v53 = vpop.f32.mrb[61].mxu0 }
 0x9b4   :  { %v2425_v23 = vadd.f32 %v2568_v39, %v2424_v53  ;;  %v2870_v36 = vpop.f32.mrb[62].mxu0 }
 0x9b5   :  { %v2453_v57 = vadd.f32 %v2433_v55, %v4278_v1  ;;  %v2436_v29 = vadd.f32 %v2870_v36, %v2568_v39  ;;  %v2427_v12 = vpop.f32.mrb[63].mxu0 }
 0x9b6   :  { %v2451_v38 = vadd.f32 %v2425_v23, %v4272_v15  ;;  %v2428_v33 = vadd.f32 %v2568_v39, %v2427_v12 }
 0x9b7   :  { %2469 = vst.msk [vmem:[#allocation14 + $0x70] sm:$0xff] %vm164_vm0, %v2453_v57  ;;  %v2454_v14 = vadd.f32 %v2436_v29, %v4284_v26 }
 0x9b8   :  { %2467 = vst.msk [vmem:[#allocation14 + $0x60] sm:$0xff] %vm164_vm0, %v2451_v38  ;;  %v2452_v37 = vadd.f32 %v2428_v33, %v4280_v49 }
 0x9b9   :  { %2470 = vst.msk [vmem:[#allocation14 + $0x78] sm:$0xff] %vm164_vm0, %v2454_v14 }
 0x9ba   :  { %2468 = vst.msk [vmem:[#allocation14 + $0x68] sm:$0xff] %vm164_vm0, %v2452_v37 }
 0x9bb   :  { %3286 = shalt.err (!%p3283_p4)
}
 0x9bc   :  { %s3287_s21 = scalar_lea.hbm %s4528_s7, 2048 }
 0x9bd   :  { %p3288_p5 = scmp.ne.s32.totalorder %s4528_s7, %s3287_s21  ;;  %p3291_p6 = scmp.lt.u32.totalorder %s3287_s21, %s4528_s7 }
 0x9bf   :  { %p3293_p7 = pnand %p3291_p6, %p3288_p5 }
 0x9c1   :  { %3296 = shalt.err (!%p3293_p7)
}
 0x9c2   :  { %2482 = dma.vmem_to_hbm [thread:$0]  %s2477_s1, 2048, %s4528_s7, [#allocation4], %s3309_s13, %s3309_s13, %s3310_s14  }
 0x9c3   :  { %3305 = dma.done.wait [#allocation4], 2048  }
 0x9c4   :  { %3306 = vsyncadd [#allocation4], 4294965248 }
 0x9c5   :  { %2486 = vsyncpa [#allocation3], 1 }
 0x9c6   :  { %2487 = vsyncpa [#allocation6], 1 }
 0x9c7   :  { %2488 = vsyncpa [#allocation9], 1 }
 0x9c8   :  { %2489 = vsyncpa [#allocation12], 1 }
 0x9c9   :  { %2490 = vsyncpa [#allocation4], 1 }

</bundles_post_ra>
